<compile_context>
chip_gen: v7x
topology: tpu7x:2x2x1
jax: 0.10.0
libtpu: 0.0.40
codegen_flags: <defaults>
</compile_context>

<pallas_src>
import functools
import math

import numpy as np
import jax
import jax.numpy as jnp
from jax.experimental import pallas as pl
from jax.experimental.pallas import tpu as pltpu


def _round_up(a, b):
    return (a + b - 1) // b * b


def attention_conv_kernel(x_ref, w_ref, rel_ref, o_ref, *, K, TH, pad, Cout,
                          Wcl, Kout):
    """One (batch, row-tile) per grid step.

    x_ref  : (1, 1, THr, Win)       padded input rows for this tile, flattened
                                    as lane = wp*Cin + ci  (Win = Wpp*Cin)
    w_ref  : (Win, 2*Kout + Wcl)    fused block-diagonal weights [ k | v | q ]
                                    (Kout = Wpp*Cout)
    rel_ref: (K*K, TH, Wcl)         relative-position bias per window offset,
                                    pre-broadcast over rows and width lanes
    o_ref  : (1, 1, TH, Wcl)        lane-dense output tile (lane = w*Cout + c)
    """
    xt = x_ref[0, 0]                                   # (THr, Win)

    # Fused 1x1 convs on the MXU; result is already lane-dense, no reshape.
    mm = jnp.dot(xt, w_ref[...], preferred_element_type=jnp.float32)
    kmap = mm[:, :Kout]                                # (THr, Kout)
    vmap = mm[:, Kout:2 * Kout]                        # (THr, Kout)
    q = mm[pad:pad + TH, 2 * Kout:]                    # (TH,  Wcl)

    # kw shift: one lane rotation per kw on the full haloed map (hoisted out
    # of the kh loop), then cheap sublane slices per kh.
    k_roll, v_roll = [], []
    for kw in range(K):
        sh = kw * Cout
        if sh:
            k_roll.append(pltpu.roll(kmap, shift=Kout - sh, axis=1)[:, :Wcl])
            v_roll.append(pltpu.roll(vmap, shift=Kout - sh, axis=1)[:, :Wcl])
        else:
            k_roll.append(kmap[:, :Wcl])
            v_roll.append(vmap[:, :Wcl])

    # Direct softmax over the K*K window offsets (per pixel, per channel):
    # phase 1 computes all logits and their max, phase 2 does one exp per
    # offset and accumulates numerator / denominator.
    logits = []
    for kh in range(K):
        for kw in range(K):
            k_win = k_roll[kw][kh:kh + TH, :]          # (TH, Wcl)
            rel = rel_ref[kh * K + kw]                 # (TH, Wcl)
            logits.append(q * (k_win + rel))

    m = logits[0]
    for lg in logits[1:]:
        m = jnp.maximum(m, lg)

    den = None
    num = None
    for kh in range(K):
        for kw in range(K):
            p_ = jnp.exp(logits[kh * K + kw] - m)
            v_win = v_roll[kw][kh:kh + TH, :]
            den = p_ if den is None else den + p_
            num = p_ * v_win if num is None else num + p_ * v_win

    # Exact normalization (the approx EUP reciprocal was the source of the
    # previous tolerance failure).
    o_ref[0, 0] = (num / den).astype(o_ref.dtype)


def attention_conv(x_nchw, wq, wk, wv, rel_h, rel_w, *, kernel_size, stride=1,
                   padding=0, tile_h=None):
    """Pallas implementation of AttentionConv.forward (stride must be 1)."""
    assert stride == 1, "kernel implemented for stride=1"
    B, Cin, H, W = x_nchw.shape
    Cout = wq.shape[1]
    K = kernel_size
    p = padding
    Hp, Wp = H + 2 * p, W + 2 * p
    # The torch module views the unfolded output back to (H, W), which only
    # works when the output spatial size equals the input spatial size.
    assert Hp - K + 1 == H and Wp - K + 1 == W
    assert Cout % 2 == 0

    # --- row tiling ----------------------------------------------------------
    # Default: one tile per image (nT=1).  The batch axis stays a "parallel"
    # grid axis so v7x megacore still has >=2 parallel steps; on v5e/v6e the
    # bigger tile just amortizes the per-step pipeline overhead.
    if tile_h is None:
        tile_h = H
    TH = tile_h
    assert H % TH == 0
    nT = H // TH
    THr = _round_up(TH + K - 1, 8)          # rows per haloed tile (sublane mult)

    # --- lane-dense widths ---------------------------------------------------
    Wcl = _round_up(W * Cout, 128)          # output lanes (w*Cout + c)
    assert Wcl % Cout == 0
    r_in = 128 // math.gcd(128, Cin)
    r_out = 128 // math.gcd(128, Cout)
    align = r_in * r_out // math.gcd(r_in, r_out)
    Wpp = _round_up(max(Wp, -(-((K - 1) * Cout + Wcl) // Cout)), align)
    Win = Wpp * Cin                         # input lanes  (wp*Cin + ci)
    Kout = Wpp * Cout                       # k/v map lanes (wp*Cout + c)

    Hp_ext = (nT - 1) * TH + THr
    bottom = Hp_ext - H - p

    # --- inputs: NCHW -> NHWC, zero-pad, flatten (w, ci) into lanes ----------
    x = jnp.transpose(x_nchw, (0, 2, 3, 1))                        # (B,H,W,Cin)
    xp = jnp.pad(x, ((0, 0), (p, bottom), (p, Wpp - W - p), (0, 0)))
    xp = xp.reshape(B, Hp_ext, Win)
    if nT == 1:
        x_tiles = xp[:, None]                                      # (B,1,THr,Win)
    else:
        # TODO(synk): nT>1 duplicates the K-1 halo rows on the host; a manual
        # DMA path (memory_space=pl.ANY) would avoid the redundant HBM traffic.
        x_tiles = jnp.stack([xp[:, i * TH:i * TH + THr] for i in range(nT)],
                            axis=1)                                # (B,nT,THr,Win)

    dtype = x.dtype

    # --- fused block-diagonal weights  [ k | v | q ] -------------------------
    eye = jnp.eye(Wpp, dtype=dtype)
    sel_np = np.zeros((Wpp, Wcl // Cout), dtype=np.float32)        # q col shift
    for w in range(W):
        sel_np[w + p, w] = 1.0
    sel = jnp.asarray(sel_np, dtype=dtype)
    w_all = jnp.concatenate([jnp.kron(eye, wk.astype(dtype)),      # (Win, Kout)
                             jnp.kron(eye, wv.astype(dtype)),      # (Win, Kout)
                             jnp.kron(sel, wq.astype(dtype))],     # (Win, Wcl)
                            axis=1)

    # --- relative-position bias, pre-broadcast to (K*K, TH, Wcl) -------------
    C2 = Cout // 2
    rel_kc = jnp.concatenate(
        [jnp.broadcast_to(rel_h[:, None, None], (K, K, C2)),
         jnp.broadcast_to(rel_w[None, :, None], (K, K, C2))],
        axis=-1).reshape(K * K, Cout)
    rel_lane = jnp.tile(rel_kc[:, None, :],
                        (1, Wcl // Cout, 1)).reshape(K * K, Wcl)
    rel_big = jnp.broadcast_to(rel_lane[:, None, :],
                               (K * K, TH, Wcl)).astype(jnp.float32)

    kernel = functools.partial(attention_conv_kernel, K=K, TH=TH, pad=p,
                               Cout=Cout, Wcl=Wcl, Kout=Kout)
    out = pl.pallas_call(
        kernel,
        out_shape=jax.ShapeDtypeStruct((B, nT, TH, Wcl), dtype),
        grid=(B, nT),
        in_specs=[
            pl.BlockSpec((1, 1, THr, Win), lambda b, i: (b, i, 0, 0)),
            pl.BlockSpec((Win, 2 * Kout + Wcl), lambda b, i: (0, 0)),
            pl.BlockSpec((K * K, TH, Wcl), lambda b, i: (0, 0, 0)),
        ],
        out_specs=pl.BlockSpec((1, 1, TH, Wcl), lambda b, i: (b, i, 0, 0)),
        compiler_params=pltpu.CompilerParams(
            dimension_semantics=("parallel", "parallel")),
    )(x_tiles, w_all, rel_big)

    out = out.reshape(B, H, Wcl)[:, :, :W * Cout].reshape(B, H, W, Cout)
    return jnp.transpose(out, (0, 3, 1, 2))                        # NCHW


def attention_conv_ref(x_nchw, wq, wk, wv, rel_h, rel_w, *, kernel_size,
                       padding):
    """Pure-JAX reference mirroring the PyTorch forward (for validation)."""
    B, Cin, H, W = x_nchw.shape
    Cout = wq.shape[1]
    C2 = Cout // 2
    K = kernel_size
    p = padding
    x = jnp.transpose(x_nchw, (0, 2, 3, 1))
    xp = jnp.pad(x, ((0, 0), (p, p), (p, p), (0, 0)))
    q = jnp.einsum('bhwc,cd->bhwd', x, wq)
    kmap = jnp.einsum('bhwc,cd->bhwd', xp, wk)
    vmap = jnp.einsum('bhwc,cd->bhwd', xp, wv)
    logits, vals = [], []
    for kh in range(K):
        for kw in range(K):
            kwn = kmap[:, kh:kh + H, kw:kw + W, :]
            vwn = vmap[:, kh:kh + H, kw:kw + W, :]
            krel = jnp.concatenate([kwn[..., :C2] + rel_h[kh],
                                    kwn[..., C2:] + rel_w[kw]], axis=-1)
            logits.append(q * krel)
            vals.append(vwn)
    lg = jnp.stack(logits, axis=-1)          # (B, H, W, Cout, K*K)
    vv = jnp.stack(vals, axis=-1)
    attn = jax.nn.softmax(lg, axis=-1)
    out = jnp.sum(attn * vv, axis=-1)        # (B, H, W, Cout)
    return jnp.transpose(out, (0, 3, 1, 2))  # NCHW


if __name__ == "__main__":
    # Shapes consistent with the module: in_channels=4, out_channels=8,
    # kernel_size=3, stride=1, padding=1, groups=2 (groups is a numeric no-op).
    B, Cin, H, W = 2, 4, 16, 16
    Cout, K, pad = 8, 3, 1

    key = jax.random.PRNGKey(0)
    kx, kq, kk, kv, krh, krw = jax.random.split(key, 6)

    x = jax.random.normal(kx, (B, Cin, H, W), dtype=jnp.float32)

    # kaiming_normal_(mode='fan_out', relu) for 1x1 conv -> std = sqrt(2/C_out)
    std = float(np.sqrt(2.0 / Cout))
    wq = jax.random.normal(kq, (Cin, Cout), jnp.float32) * std
    wk = jax.random.normal(kk, (Cin, Cout), jnp.float32) * std
    wv = jax.random.normal(kv, (Cin, Cout), jnp.float32) * std
    rel_h = jax.random.normal(krh, (K,), jnp.float32)   # torch (1,1,1,K,1)
    rel_w = jax.random.normal(krw, (K,), jnp.float32)   # torch (1,1,1,1,K)

    out = attention_conv(x, wq, wk, wv, rel_h, rel_w,
                         kernel_size=K, stride=1, padding=pad)
    out = jax.block_until_ready(out)

    ref = attention_conv_ref(x, wq, wk, wv, rel_h, rel_w,
                             kernel_size=K, padding=pad)
    np.testing.assert_allclose(np.asarray(out), np.asarray(ref),
                               rtol=2e-3, atol=2e-3)
    print("KERNEL_OK")
</pallas_src>

<mosaic_0001>
module attributes {stable_mosaic.version = 11 : i64} {
  func.func @attention_conv_kernel(%arg0: i32, %arg1: i32, %arg2: memref<1x1x24x128xf32, #tpu.memory_space<vmem>>, %arg3: memref<128x640xf32, #tpu.memory_space<vmem>>, %arg4: memref<9x16x128xf32, #tpu.memory_space<vmem>>, %arg5: memref<1x1x16x128xf32, #tpu.memory_space<vmem>>) attributes {dimension_semantics = [#tpu.dimension_semantics<parallel>, #tpu.dimension_semantics<parallel>], iteration_bounds = array<i64: 2, 1>, scalar_prefetch = 0 : i64, scratch_operands = 0 : i64, tpu.core_type = #tpu.core_type<tc>, window_params = [{transform_indices = @transform_0, window_bounds = array<i64: 1, 1, 24, 128>}, {pipeline_mode = #tpu.pipeline_mode<synchronous>, transform_indices = @transform_1, window_bounds = array<i64: 128, 640>}, {pipeline_mode = #tpu.pipeline_mode<synchronous>, transform_indices = @transform_2, window_bounds = array<i64: 9, 16, 128>}, {transform_indices = @transform_3, window_bounds = array<i64: 1, 1, 16, 128>}]} {
    %c0 = arith.constant 0 : index
    %c0_0 = arith.constant 0 : index
    %c0_1 = arith.constant 0 : index
    %c0_2 = arith.constant 0 : index
    %0 = vector.load %arg2[%c0, %c0_0, %c0_1, %c0_2] : memref<1x1x24x128xf32, #tpu.memory_space<vmem>>, vector<1x1x24x128xf32>
    %1 = vector.shape_cast %0 : vector<1x1x24x128xf32> to vector<24x128xf32>
    %c0_3 = arith.constant 0 : index
    %c0_4 = arith.constant 0 : index
    %2 = vector.load %arg3[%c0_3, %c0_4] : memref<128x640xf32, #tpu.memory_space<vmem>>, vector<128x640xf32>
    %cst = arith.constant dense<0.000000e+00> : vector<24x640xf32>
    %3 = tpu.matmul %1, %2, %cst {dimension_numbers = #tpu.dot_dimension_numbers<[1], [0], [0], [1], [0, 0, 1, 1], [], []>} : vector<24x128xf32>, vector<128x640xf32>, vector<24x640xf32> -> vector<24x640xf32>
    %4 = vector.extract_strided_slice %3 {offsets = [0, 0], sizes = [24, 256], strides = [1, 1]} : vector<24x640xf32> to vector<24x256xf32>
    %5 = vector.extract_strided_slice %3 {offsets = [0, 256], sizes = [24, 256], strides = [1, 1]} : vector<24x640xf32> to vector<24x256xf32>
    %6 = vector.extract_strided_slice %3 {offsets = [1, 512], sizes = [16, 128], strides = [1, 1]} : vector<24x640xf32> to vector<16x128xf32>
    %7 = vector.extract_strided_slice %4 {offsets = [0, 0], sizes = [24, 128], strides = [1, 1]} : vector<24x256xf32> to vector<24x128xf32>
    %8 = vector.extract_strided_slice %5 {offsets = [0, 0], sizes = [24, 128], strides = [1, 1]} : vector<24x256xf32> to vector<24x128xf32>
    %c248_i32 = arith.constant 248 : i32
    %9 = tpu.dynamic_rotate %4 by %c248_i32 dim 1 : vector<24x256xf32>, i32 -> vector<24x256xf32>
    %10 = vector.extract_strided_slice %9 {offsets = [0, 0], sizes = [24, 128], strides = [1, 1]} : vector<24x256xf32> to vector<24x128xf32>
    %c248_i32_5 = arith.constant 248 : i32
    %11 = tpu.dynamic_rotate %5 by %c248_i32_5 dim 1 : vector<24x256xf32>, i32 -> vector<24x256xf32>
    %12 = vector.extract_strided_slice %11 {offsets = [0, 0], sizes = [24, 128], strides = [1, 1]} : vector<24x256xf32> to vector<24x128xf32>
    %c240_i32 = arith.constant 240 : i32
    %13 = tpu.dynamic_rotate %4 by %c240_i32 dim 1 : vector<24x256xf32>, i32 -> vector<24x256xf32>
    %14 = vector.extract_strided_slice %13 {offsets = [0, 0], sizes = [24, 128], strides = [1, 1]} : vector<24x256xf32> to vector<24x128xf32>
    %c240_i32_6 = arith.constant 240 : i32
    %15 = tpu.dynamic_rotate %5 by %c240_i32_6 dim 1 : vector<24x256xf32>, i32 -> vector<24x256xf32>
    %16 = vector.extract_strided_slice %15 {offsets = [0, 0], sizes = [24, 128], strides = [1, 1]} : vector<24x256xf32> to vector<24x128xf32>
    %17 = vector.extract_strided_slice %7 {offsets = [0, 0], sizes = [16, 128], strides = [1, 1]} : vector<24x128xf32> to vector<16x128xf32>
    %c0_7 = arith.constant 0 : index
    %c0_8 = arith.constant 0 : index
    %c0_9 = arith.constant 0 : index
    %18 = vector.load %arg4[%c0_7, %c0_8, %c0_9] : memref<9x16x128xf32, #tpu.memory_space<vmem>>, vector<1x16x128xf32>
    %19 = vector.shape_cast %18 : vector<1x16x128xf32> to vector<16x128xf32>
    %20 = arith.addf %17, %19 : vector<16x128xf32>
    %21 = arith.mulf %6, %20 : vector<16x128xf32>
    %22 = vector.extract_strided_slice %10 {offsets = [0, 0], sizes = [16, 128], strides = [1, 1]} : vector<24x128xf32> to vector<16x128xf32>
    %c1 = arith.constant 1 : index
    %c0_10 = arith.constant 0 : index
    %c0_11 = arith.constant 0 : index
    %23 = vector.load %arg4[%c1, %c0_10, %c0_11] : memref<9x16x128xf32, #tpu.memory_space<vmem>>, vector<1x16x128xf32>
    %24 = vector.shape_cast %23 : vector<1x16x128xf32> to vector<16x128xf32>
    %25 = arith.addf %22, %24 : vector<16x128xf32>
    %26 = arith.mulf %6, %25 : vector<16x128xf32>
    %27 = vector.extract_strided_slice %14 {offsets = [0, 0], sizes = [16, 128], strides = [1, 1]} : vector<24x128xf32> to vector<16x128xf32>
    %c2 = arith.constant 2 : index
    %c0_12 = arith.constant 0 : index
    %c0_13 = arith.constant 0 : index
    %28 = vector.load %arg4[%c2, %c0_12, %c0_13] : memref<9x16x128xf32, #tpu.memory_space<vmem>>, vector<1x16x128xf32>
    %29 = vector.shape_cast %28 : vector<1x16x128xf32> to vector<16x128xf32>
    %30 = arith.addf %27, %29 : vector<16x128xf32>
    %31 = arith.mulf %6, %30 : vector<16x128xf32>
    %32 = vector.extract_strided_slice %7 {offsets = [1, 0], sizes = [16, 128], strides = [1, 1]} : vector<24x128xf32> to vector<16x128xf32>
    %c3 = arith.constant 3 : index
    %c0_14 = arith.constant 0 : index
    %c0_15 = arith.constant 0 : index
    %33 = vector.load %arg4[%c3, %c0_14, %c0_15] : memref<9x16x128xf32, #tpu.memory_space<vmem>>, vector<1x16x128xf32>
    %34 = vector.shape_cast %33 : vector<1x16x128xf32> to vector<16x128xf32>
    %35 = arith.addf %32, %34 : vector<16x128xf32>
    %36 = arith.mulf %6, %35 : vector<16x128xf32>
    %37 = vector.extract_strided_slice %10 {offsets = [1, 0], sizes = [16, 128], strides = [1, 1]} : vector<24x128xf32> to vector<16x128xf32>
    %c4 = arith.constant 4 : index
    %c0_16 = arith.constant 0 : index
    %c0_17 = arith.constant 0 : index
    %38 = vector.load %arg4[%c4, %c0_16, %c0_17] : memref<9x16x128xf32, #tpu.memory_space<vmem>>, vector<1x16x128xf32>
    %39 = vector.shape_cast %38 : vector<1x16x128xf32> to vector<16x128xf32>
    %40 = arith.addf %37, %39 : vector<16x128xf32>
    %41 = arith.mulf %6, %40 : vector<16x128xf32>
    %42 = vector.extract_strided_slice %14 {offsets = [1, 0], sizes = [16, 128], strides = [1, 1]} : vector<24x128xf32> to vector<16x128xf32>
    %c5 = arith.constant 5 : index
    %c0_18 = arith.constant 0 : index
    %c0_19 = arith.constant 0 : index
    %43 = vector.load %arg4[%c5, %c0_18, %c0_19] : memref<9x16x128xf32, #tpu.memory_space<vmem>>, vector<1x16x128xf32>
    %44 = vector.shape_cast %43 : vector<1x16x128xf32> to vector<16x128xf32>
    %45 = arith.addf %42, %44 : vector<16x128xf32>
    %46 = arith.mulf %6, %45 : vector<16x128xf32>
    %47 = vector.extract_strided_slice %7 {offsets = [2, 0], sizes = [16, 128], strides = [1, 1]} : vector<24x128xf32> to vector<16x128xf32>
    %c6 = arith.constant 6 : index
    %c0_20 = arith.constant 0 : index
    %c0_21 = arith.constant 0 : index
    %48 = vector.load %arg4[%c6, %c0_20, %c0_21] : memref<9x16x128xf32, #tpu.memory_space<vmem>>, vector<1x16x128xf32>
    %49 = vector.shape_cast %48 : vector<1x16x128xf32> to vector<16x128xf32>
    %50 = arith.addf %47, %49 : vector<16x128xf32>
    %51 = arith.mulf %6, %50 : vector<16x128xf32>
    %52 = vector.extract_strided_slice %10 {offsets = [2, 0], sizes = [16, 128], strides = [1, 1]} : vector<24x128xf32> to vector<16x128xf32>
    %c7 = arith.constant 7 : index
    %c0_22 = arith.constant 0 : index
    %c0_23 = arith.constant 0 : index
    %53 = vector.load %arg4[%c7, %c0_22, %c0_23] : memref<9x16x128xf32, #tpu.memory_space<vmem>>, vector<1x16x128xf32>
    %54 = vector.shape_cast %53 : vector<1x16x128xf32> to vector<16x128xf32>
    %55 = arith.addf %52, %54 : vector<16x128xf32>
    %56 = arith.mulf %6, %55 : vector<16x128xf32>
    %57 = vector.extract_strided_slice %14 {offsets = [2, 0], sizes = [16, 128], strides = [1, 1]} : vector<24x128xf32> to vector<16x128xf32>
    %c8 = arith.constant 8 : index
    %c0_24 = arith.constant 0 : index
    %c0_25 = arith.constant 0 : index
    %58 = vector.load %arg4[%c8, %c0_24, %c0_25] : memref<9x16x128xf32, #tpu.memory_space<vmem>>, vector<1x16x128xf32>
    %59 = vector.shape_cast %58 : vector<1x16x128xf32> to vector<16x128xf32>
    %60 = arith.addf %57, %59 : vector<16x128xf32>
    %61 = arith.mulf %6, %60 : vector<16x128xf32>
    %62 = arith.maximumf %21, %26 : vector<16x128xf32>
    %63 = arith.maximumf %62, %31 : vector<16x128xf32>
    %64 = arith.maximumf %63, %36 : vector<16x128xf32>
    %65 = arith.maximumf %64, %41 : vector<16x128xf32>
    %66 = arith.maximumf %65, %46 : vector<16x128xf32>
    %67 = arith.maximumf %66, %51 : vector<16x128xf32>
    %68 = arith.maximumf %67, %56 : vector<16x128xf32>
    %69 = arith.maximumf %68, %61 : vector<16x128xf32>
    %70 = arith.subf %21, %69 : vector<16x128xf32>
    %71 = math.exp %70 : vector<16x128xf32>
    %72 = vector.extract_strided_slice %8 {offsets = [0, 0], sizes = [16, 128], strides = [1, 1]} : vector<24x128xf32> to vector<16x128xf32>
    %73 = arith.mulf %71, %72 : vector<16x128xf32>
    %74 = arith.subf %26, %69 : vector<16x128xf32>
    %75 = math.exp %74 : vector<16x128xf32>
    %76 = vector.extract_strided_slice %12 {offsets = [0, 0], sizes = [16, 128], strides = [1, 1]} : vector<24x128xf32> to vector<16x128xf32>
    %77 = arith.addf %71, %75 : vector<16x128xf32>
    %78 = arith.mulf %75, %76 : vector<16x128xf32>
    %79 = arith.addf %73, %78 : vector<16x128xf32>
    %80 = arith.subf %31, %69 : vector<16x128xf32>
    %81 = math.exp %80 : vector<16x128xf32>
    %82 = vector.extract_strided_slice %16 {offsets = [0, 0], sizes = [16, 128], strides = [1, 1]} : vector<24x128xf32> to vector<16x128xf32>
    %83 = arith.addf %77, %81 : vector<16x128xf32>
    %84 = arith.mulf %81, %82 : vector<16x128xf32>
    %85 = arith.addf %79, %84 : vector<16x128xf32>
    %86 = arith.subf %36, %69 : vector<16x128xf32>
    %87 = math.exp %86 : vector<16x128xf32>
    %88 = vector.extract_strided_slice %8 {offsets = [1, 0], sizes = [16, 128], strides = [1, 1]} : vector<24x128xf32> to vector<16x128xf32>
    %89 = arith.addf %83, %87 : vector<16x128xf32>
    %90 = arith.mulf %87, %88 : vector<16x128xf32>
    %91 = arith.addf %85, %90 : vector<16x128xf32>
    %92 = arith.subf %41, %69 : vector<16x128xf32>
    %93 = math.exp %92 : vector<16x128xf32>
    %94 = vector.extract_strided_slice %12 {offsets = [1, 0], sizes = [16, 128], strides = [1, 1]} : vector<24x128xf32> to vector<16x128xf32>
    %95 = arith.addf %89, %93 : vector<16x128xf32>
    %96 = arith.mulf %93, %94 : vector<16x128xf32>
    %97 = arith.addf %91, %96 : vector<16x128xf32>
    %98 = arith.subf %46, %69 : vector<16x128xf32>
    %99 = math.exp %98 : vector<16x128xf32>
    %100 = vector.extract_strided_slice %16 {offsets = [1, 0], sizes = [16, 128], strides = [1, 1]} : vector<24x128xf32> to vector<16x128xf32>
    %101 = arith.addf %95, %99 : vector<16x128xf32>
    %102 = arith.mulf %99, %100 : vector<16x128xf32>
    %103 = arith.addf %97, %102 : vector<16x128xf32>
    %104 = arith.subf %51, %69 : vector<16x128xf32>
    %105 = math.exp %104 : vector<16x128xf32>
    %106 = vector.extract_strided_slice %8 {offsets = [2, 0], sizes = [16, 128], strides = [1, 1]} : vector<24x128xf32> to vector<16x128xf32>
    %107 = arith.addf %101, %105 : vector<16x128xf32>
    %108 = arith.mulf %105, %106 : vector<16x128xf32>
    %109 = arith.addf %103, %108 : vector<16x128xf32>
    %110 = arith.subf %56, %69 : vector<16x128xf32>
    %111 = math.exp %110 : vector<16x128xf32>
    %112 = vector.extract_strided_slice %12 {offsets = [2, 0], sizes = [16, 128], strides = [1, 1]} : vector<24x128xf32> to vector<16x128xf32>
    %113 = arith.addf %107, %111 : vector<16x128xf32>
    %114 = arith.mulf %111, %112 : vector<16x128xf32>
    %115 = arith.addf %109, %114 : vector<16x128xf32>
    %116 = arith.subf %61, %69 : vector<16x128xf32>
    %117 = math.exp %116 : vector<16x128xf32>
    %118 = vector.extract_strided_slice %16 {offsets = [2, 0], sizes = [16, 128], strides = [1, 1]} : vector<24x128xf32> to vector<16x128xf32>
    %119 = arith.addf %113, %117 : vector<16x128xf32>
    %120 = arith.mulf %117, %118 : vector<16x128xf32>
    %121 = arith.addf %115, %120 : vector<16x128xf32>
    %122 = arith.divf %121, %119 : vector<16x128xf32>
    %c0_26 = arith.constant 0 : index
    %c0_27 = arith.constant 0 : index
    %c0_28 = arith.constant 0 : index
    %c0_29 = arith.constant 0 : index
    %123 = vector.load %arg5[%c0_26, %c0_27, %c0_28, %c0_29] : memref<1x1x16x128xf32, #tpu.memory_space<vmem>>, vector<1x1x16x128xf32>
    %124 = vector.shape_cast %123 : vector<1x1x16x128xf32> to vector<16x128xf32>
    %125 = vector.shape_cast %122 : vector<16x128xf32> to vector<1x1x16x128xf32>
    tpu.vector_store %arg5[%c0_26, %c0_27, %c0_28, %c0_29], %125 {strides = array<i32>} : memref<1x1x16x128xf32, #tpu.memory_space<vmem>>, vector<1x1x16x128xf32>,
    return
  }
  func.func @transform_0(%arg0: i32, %arg1: i32) -> (i32, i32, i32, i32) {
    %c0_i32 = arith.constant 0 : i32
    %c0_i32_0 = arith.constant 0 : i32
    %c0_i32_1 = arith.constant 0 : i32
    return %arg0, %arg1, %c0_i32, %c0_i32_0 : i32, i32, i32, i32
  }
  func.func @transform_1(%arg0: i32, %arg1: i32) -> (i32, i32) {
    %c0_i32 = arith.constant 0 : i32
    %c0_i32_0 = arith.constant 0 : i32
    %c0_i32_1 = arith.constant 0 : i32
    return %c0_i32, %c0_i32_0 : i32, i32
  }
  func.func @transform_2(%arg0: i32, %arg1: i32) -> (i32, i32, i32) {
    %c0_i32 = arith.constant 0 : i32
    %c0_i32_0 = arith.constant 0 : i32
    %c0_i32_1 = arith.constant 0 : i32
    %c0_i32_2 = arith.constant 0 : i32
    return %c0_i32, %c0_i32_0, %c0_i32_1 : i32, i32, i32
  }
  func.func @transform_3(%arg0: i32, %arg1: i32) -> (i32, i32, i32, i32) {
    %c0_i32 = arith.constant 0 : i32
    %c0_i32_0 = arith.constant 0 : i32
    %c0_i32_1 = arith.constant 0 : i32
    return %arg0, %arg1, %c0_i32, %c0_i32_0 : i32, i32, i32, i32
  }
}

</mosaic_0001>

<bundles_post_ra>
// kernel: tpu_custom_call.1
= control target key start
LH: loop header
LB: loop body
LE: loop exit
PB: predicated region body
PF: predicated region fallthrough
CT: control target
= control target key end

     0   :  { %8 = vsyncpa [#allocation3], 0  ;;  %s2389_s0 = inlined_call_operand.hbm [shape: f32[2,1,24,128], index: 0, kind: input, shape index: {}]   ;;  %s2390_s1 = inlined_call_operand.hbm [shape: f32[128,640], index: 1, kind: input, shape index: {}]   ;;  %s2391_s2 = inlined_call_operand.hbm [shape: f32[9,16,128], index: 2, kind: input, shape index: {}]   ;;  %s2392_s3 = inlined_call_operand.hbm [shape: f32[2,1,16,128], index: 3, kind: output, shape index: {}]  }
   0x1   :  { %10 = vsyncpa [#allocation3 + $0x1], 0 }
   0x2   :  { %11 = vsyncpa [#allocation6], 0 }
   0x3   :  { %12 = vsyncpa [#allocation4], 0 }
   0x4   :  { %14 = vsyncpa [#allocation4 + $0x1], 0  ;;  %s1723_s12 = smov 0   ;;  %s1725_s13 = smov 0  }
   0x5   :  { %s1727_s14 = smov 0   ;;  %s1729_s15 = smov 0  }
   0x6   :  { %s1731_s16 = smov 0   ;;  %s1733_s17 = smov 0  }
   0x7 LB: > { %s1176_s18 = sadd.s32 4294967295, %s1686_s17   ;;  %s1177_s19 = sadd.s32 4294967294, %s1686_s17   ;;  %s1686_s17 = sphi %s1733_s17, %s20_s17   ;;  %s1682_s16 = sphi %s1731_s16, %s2414_s16   ;;  %s1678_s15 = sphi %s1729_s15, %s2413_s15   ;;  %s1674_s14 = sphi %s1727_s14, %s2412_s14   ;;  %s1670_s13 = sphi %s1725_s13, %s2411_s13   ;;  %s1666_s12 = sphi %s1723_s12, %s2410_s12  }
   0x8   : > { %p54_p0 = scmp.ne.s32.totalorder %s1670_s13, %s1666_s12  ;;  %p1757_p1 = scmp.eq.s32.totalorder %s1176_s18, 0 }
   0x9   : > { %p1761_p2 = scmp.eq.s32.totalorder %s1176_s18, 1  ;;  %p128_p3 = scmp.eq.s32.totalorder %s1177_s19, 1 }
   0xa   : > { %s2397_s20 = scalar_select %p1757_p1, 1, 0 }
   0xb   : > { %p1767_p4 = por %p1757_p1, %p54_p0  ;;  %p1178_p5 = scmp.ge.s32.totalorder %s1686_s17, 1 }
   0xc   : > { %p1772_p6 = por %p128_p3, %p54_p0  ;;  %p135_p7 = scmp.lt.s32.totalorder %s1686_s17, 3 }
   0xd   : > { %s2399_s22 = scalar_select %p1767_p4, 1, 0 }
   0xe   : > { %s2400_s23 = scalar_select %p1772_p6, 1, 0 }
   0xf   : > { %p1777_p8 = pnand %p1178_p5, %p135_p7  ;;  %s1688_s25 = smov [#allocation5]  }
  0x10   : > { %s147_s26 = sshll.u32 %s1688_s25, 4  ;;  %s1689_s28 = smov [#allocation7]   ;;  %s1781_s26 = int_to_ptr.vmem [resolvable:$true] %s147_s26 }
  0x11   : > { %p1372_p9 = pneg %p1777_p8  ;;  %s160_s29 = sshll.u32 %s1689_s28, 4  ;;  %s1792_s29 = int_to_ptr.vmem [resolvable:$true] %s160_s29 }
  0x12   : > { %s1514_s5 = scalar_lea.hbm %s2390_s1, 10240 }
  0x13   : > { %p1788_p11 = pnand %p1372_p9, %p1757_p1  ;;  %p1515_p12 = scmp.ne.s32.totalorder %s2390_s1, %s1514_s5 }
  0x14   : > { %p1521_p5 = scmp.lt.u32.totalorder %s1514_s5, %s2390_s1 }
  0x15   : > { %p1516_p13 = pneg %p1788_p11 }
  0x17   : > { %p1517_p0 = pnand %p1516_p13, %p1515_p12 }
  0x19   : > { %p1518_p3 = pneg %p1517_p0 }
  0x1b   : > { %p1523_p7 = pnand %p1521_p5, %p1518_p3 }
  0x1d   : > { %1526 = shalt.err (!%p1523_p7)
}
  0x1e   : > { %s1527_s10 = scalar_lea.vmem %s1781_s26, 10240  ;;  %p1535_p1 = scmp.lt.s32.totalorder %s1781_s26, %s1781_s26 }
  0x1f   : > { %p1528_p9 = scmp.ne.s32.totalorder %s1781_s26, %s1527_s10  ;;  %p1536_p12 = scmp.lt.s32.totalorder %s1527_s10, %s1527_s10 }
  0x21   : > { %p1530_p10 = pnand %p1528_p9, %p1516_p13  ;;  %p1537_p0 = por %p1536_p12, %p1535_p1 }
  0x23   : > { %p1531_p6 = pneg %p1530_p10 }
  0x25   : > { %p1538_p4 = pnand %p1537_p0, %p1531_p6 }
  0x27   : > { %1541 = shalt.err (!%p1538_p4)
}
  0x28   : > { %s1690_s11 = smov 640   ;;  %s1691_s18 = smov 40  }
  0x29   : > { %1375 = dma.hbm_to_vmem [thread:$0]  (!%p1788_p11), %s2390_s1, 10240, %s1781_s26, [#allocation6], %s1690_s11, %s1690_s11, %s1691_s18  }
  0x2a   : > { %s1542_s4 = scalar_lea.hbm %s2391_s2, 2304 }
  0x2b   : > { %p1543_p1 = scmp.ne.s32.totalorder %s2391_s2, %s1542_s4  ;;  %p1549_p10 = scmp.lt.u32.totalorder %s1542_s4, %s2391_s2 }
  0x2d   : > { %p1545_p4 = pnand %p1543_p1, %p1516_p13 }
  0x2f   : > { %p1546_p6 = pneg %p1545_p4 }
  0x31   : > { %p1551_p3 = pnand %p1549_p10, %p1546_p6 }
  0x33   : > { %1554 = shalt.err (!%p1551_p3)
}
  0x34   : > { %s1555_s26 = scalar_lea.vmem %s1792_s29, 2304  ;;  %p1563_p12 = scmp.lt.s32.totalorder %s1792_s29, %s1792_s29 }
  0x35   : > { %p1556_p5 = scmp.ne.s32.totalorder %s1792_s29, %s1555_s26  ;;  %p1564_p0 = scmp.lt.s32.totalorder %s1555_s26, %s1555_s26 }
  0x37   : > { %p1558_p7 = pnand %p1556_p5, %p1516_p13  ;;  %p1565_p1 = por %p1564_p0, %p1563_p12 }
  0x39   : > { %p1559_p9 = pneg %p1558_p7 }
  0x3b   : > { %p1566_p4 = pnand %p1565_p1, %p1559_p9 }
  0x3d   : > { %1569 = shalt.err (!%p1566_p4)
}
  0x3e   : > { %s1692_s9 = smov 128   ;;  %s1693_s10 = smov 8  }
  0x3f   : > { %1378 = dma.hbm_to_vmem [thread:$0]  (!%p1788_p11), %s2391_s2, 2304, %s1792_s29, [#allocation6], %s1692_s9, %s1692_s9, %s1693_s10  }
  0x40   : > { %s32_s19 = sadd.s32 1, %s1682_s16  ;;  %s41_s25 = sadd.s32 1, %s1674_s14 }
  0x41   : > { %p34_p13 = scmp.ge.s32.totalorder %s32_s19, 2  ;;  %p48_p6 = scmp.ne.s32.totalorder %s1674_s14, %s1670_s13 }
  0x42   : > { %p49_p10 = scmp.eq.s32.totalorder %s1686_s17, 0  ;;  %p1389_p3 = scmp.lt.s32.totalorder %s1686_s17, 2 }
  0x43   : > { %s2416_s19 = smov (%p34_p13, %s32_s19), 0  ;;  %p1859_p7 = por %p1761_p2, %p48_p6 }
  0x44   : > { %p50_p5 = por %p49_p10, %p48_p6  ;;  %s36_s28 = ssub.s32 %s1682_s16, %s2416_s19 }
  0x45   : > { %s2403_s27 = scalar_select %p1859_p7, 1, 0 }
  0x46   : > { %s174_s30 = sand.u32 1, %s1674_s14   ;;  %p39_p9 = scmp.eq.s32.totalorder %s36_s28, 0 }
  0x47   : > { %s1357_s29 = smul.u32 24, %s174_s30  ;;  %p1866_p11 = pnand %p1389_p3, %p50_p5 }
  0x48   : > { %s1871_s5 = scalar_select %p39_p9, %s1674_s14, %s41_s25  }
  0x49   : > { %s1358_s6 = smul.u32 384, %s1682_s16  ;;  %s178_s7 = scalar_lea.vmem [#allocation2], %s1357_s29 }
  0x4a   : > { %s187_s8 = sshll.u32 %s178_s7, 4  ;;  %s1881_s18 = scalar_lea.sflag [#allocation3], %s174_s30  ;;  %s1879_s8 = int_to_ptr.vmem [resolvable:$true] %s187_s8 }
  0x4b   : > { %s1877_s11 = scalar_lea.hbm %s2389_s0, %s1358_s6  ;;  %p1572_p12 = pneg %p1866_p11 }
  0x4c   : > { %s1570_s28 = scalar_lea.hbm %s1877_s11, 384  ;;  %s1575_s6 = scalar_lea.hbm %s2389_s0, 768 }
  0x4d   : > { %p1571_p2 = scmp.ne.s32.totalorder %s1877_s11, %s1570_s28  ;;  %p1576_p4 = scmp.lt.u32.totalorder %s1877_s11, %s2389_s0 }
  0x4e   : > { %p1577_p13 = scmp.lt.u32.totalorder %s1575_s6, %s1570_s28  ;;  %p1579_p10 = scmp.lt.u32.totalorder %s1570_s28, %s1877_s11 }
  0x4f   : > { %p1573_p0 = pnand %p1572_p12, %p1571_p2 }
  0x50   : > { %p1578_p6 = por %p1577_p13, %p1576_p4 }
  0x51   : > { %p1574_p1 = pneg %p1573_p0 }
  0x52   : > { %p1580_p3 = por %p1579_p10, %p1578_p6 }
  0x54   : > { %p1581_p5 = pnand %p1580_p3, %p1574_p1 }
  0x56   : > { %1584 = shalt.err (!%p1581_p5)
}
  0x57   : > { %s1585_s30 = scalar_lea.vmem %s1879_s8, 384  ;;  %s1694_s26 = smov [#allocation2]  }
  0x58   : > { %p1586_p9 = scmp.ne.s32.totalorder %s1879_s8, %s1585_s30  ;;  %s1590_s25 = sshll.u32 %s1694_s26, 4  ;;  %s1591_s25 = int_to_ptr.vmem [resolvable:$false] %s1590_s25 }
  0x59   : > { %s1592_s29 = scalar_lea.vmem %s1591_s25, 768  ;;  %p1593_p7 = scmp.lt.s32.totalorder %s1879_s8, %s1591_s25 }
  0x5a   : > { %p1588_p2 = pnand %p1586_p9, %p1572_p12  ;;  %p1594_p4 = scmp.lt.s32.totalorder %s1592_s29, %s1585_s30 }
  0x5c   : > { %p1589_p0 = pneg %p1588_p2  ;;  %p1595_p13 = por %p1594_p4, %p1593_p7 }
  0x5e   : > { %p1596_p6 = pnand %p1595_p13, %p1589_p0 }
  0x60   : > { %1599 = shalt.err (!%p1596_p6)
}
  0x61   : > { %1382 = dma.hbm_to_vmem [thread:$0]  (!%p1866_p11), %s1877_s11, 384, %s1879_s8, %s1881_s18, %s1692_s9, %s1692_s9, %s1693_s10  }
  0x62   : > { %199 = sbr.rel (%p1777_p8) target bundleno = 582 (0x246), region = 32  ;;  %s1915_s28 = sand.u32 (!%p1777_p8), 1, %s1670_s13  }
  0x63   : > { %s1359_s6 = smul.u32 (!%p1777_p8), 24, %s1915_s28  ;;  %s202_s7 = scalar_lea.sflag (!%p1777_p8), [#allocation3], %s1915_s28 }
  0x64   : > { %p2405_p7 = scmp.ne.s32.totalorder (!%p1777_p8), %s2399_s22, 0 }
  0x65   : > { %s1919_s21 = scalar_lea.vmem (!%p1777_p8), [#allocation2], %s1359_s6 }
  0x69   : > { %1653 = dma.done.wait (%p2405_p7), %s202_s7, 384  }
  0x6a   : > { %1655 = vsyncadd (%p2405_p7), %s202_s7, 4294966912  ;;  %p2406_p11 = scmp.ne.s32.totalorder %s2397_s20, 0 }
  0x6c   : > { %1657 = dma.done.wait (%p2406_p11), [#allocation6], 12544  }
  0x6d   : > { %1659 = vsyncadd (%p2406_p11), [#allocation6], 4294954752  ;;  %v1695_v0 = vmov 0.0   ;;  %v240_v1 = vld [vmem:[#allocation5 + $0x8] sm:$0xff]  ;;  %v245_v2 = vld [vmem:[#allocation5 + $0x30] sm:$0xff]  ;;  %vm1697_vm0 = vmmov 0  }
  0x6e   : > { %383 = vmatprep.mubr.f32.mxu0 %v1695_v0  ;;  %466 = vmatprep.mubr.f32.mxu1 %v1695_v0  ;;  %v242_v3 = vld [vmem:[#allocation5 + $0x18] sm:$0xff]  ;;  %v1253_v4 = vpack.c.bf16 %v245_v2, %v240_v1  ;;  %v247_v5 = vld [vmem:[#allocation5 + $0x40] sm:$0xff]  ;;  %v244_v7 = vld [vmem:[#allocation5 + $0x28] sm:$0xff]  ;;  %vm733_vm1 = vcmask 1041408   ;;  %s1698_s20 = smov 120   ;;  %s1699_s22 = smov 112  }
  0x6f   : > { %v239_v6 = vld [vmem:[#allocation5] sm:$0xff]  ;;  %v1285_v8 = vpack.c.bf16 %v247_v5, %v242_v3  ;;  %v241_v10 = vld [vmem:[#allocation5 + $0x10] sm:$0xff]  ;;  %v246_v11 = vld [vmem:[#allocation5 + $0x38] sm:$0xff]  ;;  %vm746_vm2 = vcmask 1046528   ;;  %vm635_vm3 = vcmask 1040384   ;;  %s1186_s24 = sshll.u32 %s1915_s28, 4 }
  0x70   : > { %v1255_v9 = vpack.c.bf16 %v244_v7, %v239_v6  ;;  %v250_v12 = vld [vmem:[#allocation5 + $0x58] sm:$0xff]  ;;  %1254 = vmatprep.subr.bf16.mxu0 %v1253_v4  ;;  %v1287_v13 = vpack.c.bf16 %v246_v11, %v241_v10  ;;  %v255_v14 = vld [vmem:[#allocation5 + $0x80] sm:$0xff]  ;;  %v252_v15 = vld [vmem:[#allocation5 + $0x68] sm:$0xff]  ;;  %s235_s9 = scalar_lea.vmem [#allocation8], %s1186_s24  ;;  %s1192_s10 = sshll.u32 %s1678_s15, 8 }
  0x71   : > { %v257_v16 = vld [vmem:[#allocation5 + $0x90] sm:$0xff]  ;;  %1286 = vmatprep.subr.bf16.mxu1 %v1285_v8  ;;  %v1257_v17 = vpack.c.bf16 %v255_v14, %v250_v12  ;;  %v254_v20 = vld [vmem:[#allocation5 + $0x78] sm:$0xff]  ;;  %v251_v21 = vld [vmem:[#allocation5 + $0x60] sm:$0xff]  ;;  %s1070_s4 = sshll.u32 %s235_s9, 4  ;;  %s2338_s18 = scalar_lea.hbm %s2392_s3, %s1192_s10  ;;  %s2340_s4 = int_to_ptr.vmem [resolvable:$true] %s1070_s4 }
  0x72   : > { %1256 = vmatpush1.bf16.msra.mxu0 %v1255_v9  ;;  %v1289_v18 = vpack.c.bf16 %v257_v16, %v252_v15  ;;  %v249_v19 = vld [vmem:[#allocation5 + $0x50] sm:$0xff]  ;;  %1288 = vmatpush1.bf16.msra.mxu1 %v1287_v13  ;;  %v256_v23 = vld [vmem:[#allocation5 + $0x88] sm:$0xff]  ;;  %v262_v28 = vld [vmem:[#allocation5 + $0xb8] sm:$0xff]  ;;  %s1055_s30 = scalar_lea.sflag [#allocation4], %s1915_s28  ;;  %s1600_s26 = scalar_lea.vmem %s2340_s4, 256 }
  0x73   : > { %v1259_v22 = vpack.c.bf16 %v254_v20, %v249_v19  ;;  %v260_v24 = vld [vmem:[#allocation5 + $0xa8] sm:$0xff]  ;;  %v265_v25 = vld [vmem:[#allocation5 + $0xd0] sm:$0xff]  ;;  %1258 = vmatprep.subr.bf16.mxu0 %v1257_v17  ;;  %v1291_v26 = vpack.c.bf16 %v256_v23, %v251_v21  ;;  %v267_v29 = vld [vmem:[#allocation5 + $0xe0] sm:$0xff]  ;;  %p1601_p8 = scmp.ne.s32.totalorder %s2340_s4, %s1600_s26  ;;  %p2407_p12 = scmp.ne.s32.totalorder %s2403_s27, 0 }
  0x74   : > { %1290 = vmatprep.subr.bf16.mxu1 %v1289_v18  ;;  %v1261_v27 = vpack.c.bf16 %v265_v25, %v260_v24  ;;  %v259_v30 = vld [vmem:[#allocation5 + $0xa0] sm:$0xff]  ;;  %v1293_v31 = vpack.c.bf16 %v267_v29, %v262_v28  ;;  %v264_v32 = vld [vmem:[#allocation5 + $0xc8] sm:$0xff]  ;;  %v261_v33 = vld [vmem:[#allocation5 + $0xb0] sm:$0xff]  ;;  %s1700_s15 = smov [#allocation8]  }
  0x75   : > { %v266_v34 = vld [vmem:[#allocation5 + $0xd8] sm:$0xff]  ;;  %v1263_v35 = vpack.c.bf16 %v264_v32, %v259_v30  ;;  %v275_v37 = vld [vmem:[#allocation5 + $0x120] sm:$0xff]  ;;  %v272_v38 = vld [vmem:[#allocation5 + $0x108] sm:$0xff]  ;;  %p1602_p1 = pnand %p1601_p8, %p2407_p12  ;;  %s1604_s25 = sshll.u32 %s1700_s15, 4  ;;  %s1605_s25 = int_to_ptr.vmem [resolvable:$false] %s1604_s25 }
  0x76   : > { %1260 = vmatpush1.bf16.msra.mxu0 %v1259_v22  ;;  %v270_v36 = vld [vmem:[#allocation5 + $0xf8] sm:$0xff]  ;;  %1292 = vmatpush1.bf16.msra.mxu1 %v1291_v26  ;;  %v1295_v39 = vpack.c.bf16 %v266_v34, %v261_v33  ;;  %v277_v41 = vld [vmem:[#allocation5 + $0x130] sm:$0xff]  ;;  %v271_v45 = vld [vmem:[#allocation5 + $0x100] sm:$0xff]  ;;  %s1606_s29 = scalar_lea.vmem %s1605_s25, 512  ;;  %p1607_p3 = scmp.lt.s32.totalorder %s2340_s4, %s1605_s25 }
  0x77   : > { %1262 = vmatprep.subr.bf16.mxu0 %v1261_v27  ;;  %v1265_v40 = vpack.c.bf16 %v275_v37, %v270_v36  ;;  %v269_v42 = vld [vmem:[#allocation5 + $0xf0] sm:$0xff]  ;;  %v274_v43 = vld [vmem:[#allocation5 + $0x118] sm:$0xff]  ;;  %1294 = vmatprep.subr.bf16.mxu1 %v1293_v31  ;;  %v1297_v44 = vpack.c.bf16 %v277_v41, %v272_v38  ;;  %v276_v46 = vld [vmem:[#allocation5 + $0x128] sm:$0xff]  ;;  %v1696_v38 = vmov 0.0|0.0   ;;  %p1603_p10 = pneg %p1602_p1  ;;  %p1608_p5 = scmp.lt.s32.totalorder %s1606_s29, %s1600_s26 }
  0x78   : > { %v280_v47 = vld [vmem:[#allocation5 + $0x148] sm:$0xff]  ;;  %v285_v48 = vld [vmem:[#allocation5 + $0x170] sm:$0xff]  ;;  %v282_v49 = vld [vmem:[#allocation5 + $0x158] sm:$0xff]  ;;  %v1267_v51 = vpack.c.bf16 %v274_v43, %v269_v42  ;;  %v1299_v52 = vpack.c.bf16 %v276_v46, %v271_v45 }
  0x79   : > { %v287_v50 = vld [vmem:[#allocation5 + $0x180] sm:$0xff]  ;;  %v1269_v53 = vpack.c.bf16 %v285_v48, %v280_v47  ;;  %v284_v55 = vld [vmem:[#allocation5 + $0x168] sm:$0xff]  ;;  %v281_v56 = vld [vmem:[#allocation5 + $0x150] sm:$0xff]  ;;  %p1609_p9 = por %p1608_p5, %p1607_p3 }
  0x7a   : > { %1264 = vmatpush1.bf16.msra.mxu0 %v1263_v35  ;;  %1296 = vmatpush1.bf16.msra.mxu1 %v1295_v39  ;;  %v279_v54 = vld [vmem:[#allocation5 + $0x140] sm:$0xff]  ;;  %v1301_v57 = vpack.c.bf16 %v287_v50, %v282_v49  ;;  %v286_v58 = vld [vmem:[#allocation5 + $0x178] sm:$0xff]  ;;  %v292_v61 = vld [vmem:[#allocation5 + $0x1a8] sm:$0xff] }
  0x7b   : > { %1266 = vmatprep.subr.bf16.mxu0 %v1265_v40  ;;  %1298 = vmatprep.subr.bf16.mxu1 %v1297_v44  ;;  %v290_v59 = vld [vmem:[#allocation5 + $0x198] sm:$0xff]  ;;  %v295_v60 = vld [vmem:[#allocation5 + $0x1c0] sm:$0xff]  ;;  %v297_v62 = vld [vmem:[#allocation5 + $0x1d0] sm:$0xff]  ;;  %v1271_v63 = vpack.c.bf16 %v284_v55, %v279_v54  ;;  %v1303_v1 = vpack.c.bf16 %v286_v58, %v281_v56  ;;  %p1610_p2 = pnand %p1609_p9, %p1603_p10 }
  0x7c   : > { %v1273_v2 = vpack.c.bf16 %v295_v60, %v290_v59  ;;  %v289_v3 = vld [vmem:[#allocation5 + $0x190] sm:$0xff]  ;;  %v294_v4 = vld [vmem:[#allocation5 + $0x1b8] sm:$0xff]  ;;  %v291_v5 = vld [vmem:[#allocation5 + $0x1a0] sm:$0xff]  ;;  %v1305_v6 = vpack.c.bf16 %v297_v62, %v292_v61 }
  0x7d   : > { %v296_v7 = vld [vmem:[#allocation5 + $0x1c8] sm:$0xff]  ;;  %v305_v9 = vld [vmem:[#allocation5 + $0x210] sm:$0xff]  ;;  %v302_v10 = vld [vmem:[#allocation5 + $0x1f8] sm:$0xff]  ;;  %v1275_v12 = vpack.c.bf16 %v294_v4, %v289_v3 }
  0x7e   : > { %1268 = vmatpush1.bf16.msra.mxu0 %v1267_v51  ;;  %1300 = vmatpush1.bf16.msra.mxu1 %v1299_v52  ;;  %v300_v8 = vld [vmem:[#allocation5 + $0x1e8] sm:$0xff]  ;;  %v307_v11 = vld [vmem:[#allocation5 + $0x220] sm:$0xff]  ;;  %v1307_v13 = vpack.c.bf16 %v296_v7, %v291_v5  ;;  %v301_v17 = vld [vmem:[#allocation5 + $0x1f0] sm:$0xff] }
  0x7f   : > { %1270 = vmatprep.subr.bf16.mxu0 %v1269_v53  ;;  %1302 = vmatprep.subr.bf16.mxu1 %v1301_v57  ;;  %v1277_v14 = vpack.c.bf16 %v305_v9, %v300_v8  ;;  %v299_v15 = vld [vmem:[#allocation5 + $0x1e0] sm:$0xff]  ;;  %v304_v16 = vld [vmem:[#allocation5 + $0x208] sm:$0xff]  ;;  %v1309_v18 = vpack.c.bf16 %v307_v11, %v302_v10  ;;  %v306_v19 = vld [vmem:[#allocation5 + $0x218] sm:$0xff] }
  0x80   : > { %v310_v20 = vld [vmem:[#allocation5 + $0x238] sm:$0xff]  ;;  %v315_v21 = vld [vmem:[#allocation5 + $0x260] sm:$0xff]  ;;  %v312_v22 = vld [vmem:[#allocation5 + $0x248] sm:$0xff]  ;;  %v1279_v24 = vpack.c.bf16 %v304_v16, %v299_v15  ;;  %v1311_v25 = vpack.c.bf16 %v306_v19, %v301_v17 }
  0x81   : > { %v317_v23 = vld [vmem:[#allocation5 + $0x270] sm:$0xff]  ;;  %v1281_v26 = vpack.c.bf16 %v315_v21, %v310_v20  ;;  %v314_v28 = vld [vmem:[#allocation5 + $0x258] sm:$0xff]  ;;  %v311_v30 = vld [vmem:[#allocation5 + $0x240] sm:$0xff] }
  0x82   : > { %1272 = vmatpush1.bf16.msra.mxu0 %v1271_v63  ;;  %1304 = vmatpush1.bf16.msra.mxu1 %v1303_v1  ;;  %v309_v27 = vld [vmem:[#allocation5 + $0x230] sm:$0xff]  ;;  %v1313_v29 = vpack.c.bf16 %v317_v23, %v312_v22  ;;  %v316_v31 = vld [vmem:[#allocation5 + $0x268] sm:$0xff]  ;;  %v243_v34 = vld [vmem:[#allocation5 + $0x20] sm:$0xff] }
  0x83   : > { %1274 = vmatprep.subr.bf16.mxu0 %v1273_v2  ;;  %1306 = vmatprep.subr.bf16.mxu1 %v1305_v6  ;;  %v1283_v32 = vpack.c.bf16 %v314_v28, %v309_v27  ;;  %v1315_v33 = vpack.c.bf16 %v316_v31, %v311_v30  ;;  %v248_v35 = vld [vmem:[#allocation5 + $0x48] sm:$0xff]  ;;  %v253_v39 = vld [vmem:[#allocation5 + $0x70] sm:$0xff]  ;;  %v258_v40 = vld [vmem:[#allocation5 + $0x98] sm:$0xff] }
  0x84   : > { %v1932_v36 = vld [vmem:[%s1919_s21] sm:$0xff]  ;;  %v1318_v37 = vpack.c.bf16 %v248_v35, %v243_v34  ;;  %v237_v41 = vld [vmem:[%s1919_s21 + $0x8] sm:$0xff]  ;;  %v1321_v42 = vpack.c.bf16 %v258_v40, %v253_v39  ;;  %v263_v43 = vld [vmem:[#allocation5 + $0xc0] sm:$0xff] }
  0x85   : > { %v268_v44 = vld [vmem:[#allocation5 + $0xe8] sm:$0xff]  ;;  %v238_v45 = vld [vmem:[%s1919_s21 + $0x10] sm:$0xff]  ;;  %v273_v47 = vld [vmem:[#allocation5 + $0x110] sm:$0xff] }
  0x86   : > { %1276 = vmatpush1.bf16.msra.mxu0 %v1275_v12  ;;  %1308 = vmatpush1.bf16.msra.mxu1 %v1307_v13  ;;  %v1324_v46 = vpack.c.bf16 %v268_v44, %v263_v43  ;;  %v278_v48 = vld [vmem:[#allocation5 + $0x138] sm:$0xff]  ;;  %v283_v50 = vld [vmem:[#allocation5 + $0x160] sm:$0xff]  ;;  %v288_v51 = vld [vmem:[#allocation5 + $0x188] sm:$0xff] }
  0x87   : > { %1278 = vmatprep.subr.bf16.mxu0 %v1277_v14  ;;  %1310 = vmatprep.subr.bf16.mxu1 %v1309_v18  ;;  %v1327_v49 = vpack.c.bf16 %v278_v48, %v273_v47  ;;  %v1330_v52 = vpack.c.bf16 %v288_v51, %v283_v50  ;;  %v293_v53 = vld [vmem:[#allocation5 + $0x1b0] sm:$0xff]  ;;  %v298_v54 = vld [vmem:[#allocation5 + $0x1d8] sm:$0xff]  ;;  %v303_v56 = vld [vmem:[#allocation5 + $0x200] sm:$0xff] }
  0x88   : > { %v1333_v55 = vpack.c.bf16 %v298_v54, %v293_v53  ;;  %v308_v57 = vld [vmem:[#allocation5 + $0x228] sm:$0xff]  ;;  %v313_v59 = vld [vmem:[#allocation5 + $0x250] sm:$0xff]  ;;  %v318_v60 = vld [vmem:[#allocation5 + $0x278] sm:$0xff] }
  0x89   : > { %v1336_v58 = vpack.c.bf16 %v308_v57, %v303_v56  ;;  %v1339_v61 = vpack.c.bf16 %v318_v60, %v313_v59  ;;  %v730_v62 = vld [vmem:[#allocation7 + $0x68] sm:$0xff]  ;;  %v729_v63 = vld [vmem:[#allocation7 + $0x60] sm:$0xff]  ;;  %v678_v39 = vld [vmem:[#allocation7 + $0x30] sm:$0xff] }
  0x8a   : > { %1280 = vmatpush1.bf16.msra.mxu0 %v1279_v24  ;;  %1312 = vmatpush1.bf16.msra.mxu1 %v1311_v25  ;;  %v735_v1 = vrot.slane %v730_v62, 6  ;;  %v734_v2 = vrot.slane %v729_v63, 6  ;;  %v629_v4 = vld [vmem:[#allocation7] sm:$0xff]  ;;  %v630_v7 = vld [vmem:[#allocation7 + $0x8] sm:$0xff] }
  0x8b   : > { %1282 = vmatprep.subr.bf16.mxu0 %v1281_v26  ;;  %1314 = vmatprep.subr.bf16.mxu1 %v1313_v29 }
  0x8e   : > { %1284 = vmatpush1.bf16.msra.mxu0 %v1283_v32  ;;  %1316 = vmatpush1.bf16.msra.mxu1 %v1315_v33 }
  0x8f   : > { %1317 = vmatprep.subr.bf16.mxu0 %v1696_v38  ;;  %1341 = vmatprep.subr.bf16.mxu1 %v1696_v38 }
  0x91   : > { %384 = vmatmul.mubr.f32.vlgmr.msra.gmra.mrb[0].mxu0 %v1932_v36  ;;  %467 = vmatmul.mubr.f32.vlgmr.msra.gmra.mrb[0].mxu1 %v1932_v36 }
  0x92   : > { %1319 = vmatpush3.bf16.msra.mxu0 %v1318_v37  ;;  %1349 = vmatpush3.bf16.msra.mxu1 %v1318_v37 }
  0x93   : > { %389 = vmatprep.mubr.f32.mxu0 %v1695_v0  ;;  %1320 = vmatprep.subr.bf16.mxu0 %v1696_v38 }
  0x94   : > { %1342 = vmatprep.subr.bf16.mxu1 %v1696_v38  ;;  %472 = vmatprep.mubr.f32.mxu1 %v1695_v0 }
  0x95   : > { %390 = vmatmul.mubr.f32.gmra.mrb[2].mxu0 %v237_v41  ;;  %473 = vmatmul.mubr.f32.gmra.mrb[2].mxu1 %v237_v41 }
  0x96   : > { %1322 = vmatpush3.bf16.msra.mxu0 %v1321_v42  ;;  %395 = vmatprep.mubr.f32.mxu0 %v1695_v0 }
  0x97   : > { %1350 = vmatpush3.bf16.msra.mxu1 %v1321_v42  ;;  %1323 = vmatprep.subr.bf16.mxu0 %v1696_v38 }
  0x98   : > { %1343 = vmatprep.subr.bf16.mxu1 %v1696_v38  ;;  %478 = vmatprep.mubr.f32.mxu1 %v1695_v0 }
  0x99   : > { %396 = vmatmul.mubr.f32.gmra.mrb[4].mxu0 %v238_v45  ;;  %479 = vmatmul.mubr.f32.gmra.mrb[4].mxu1 %v238_v45 }
  0x9a   : > { %1325 = vmatpush3.bf16.msra.mxu0 %v1324_v46  ;;  %1244 = vmatprep.mubr.msk.f32.mxu0 %vm1697_vm0, %v1695_v0 }
  0x9b   : > { %1351 = vmatpush3.bf16.msra.mxu1 %v1324_v46  ;;  %1326 = vmatprep.subr.bf16.mxu0 %v1696_v38 }
  0x9c   : > { %1344 = vmatprep.subr.bf16.mxu1 %v1696_v38  ;;  %1247 = vmatprep.mubr.msk.f32.mxu1 %vm1697_vm0, %v1695_v0 }
  0x9e   : > { %1328 = vmatpush3.bf16.msra.mxu0 %v1327_v49 }
  0x9f   : > { %1352 = vmatpush3.bf16.msra.mxu1 %v1327_v49  ;;  %1329 = vmatprep.subr.bf16.mxu0 %v1696_v38 }
  0xa0   : > { %1345 = vmatprep.subr.bf16.mxu1 %v1696_v38 }
  0xa2   : > { %1331 = vmatpush3.bf16.msra.mxu0 %v1330_v52 }
  0xa3   : > { %1353 = vmatpush3.bf16.msra.mxu1 %v1330_v52  ;;  %1332 = vmatprep.subr.bf16.mxu0 %v1696_v38 }
  0xa4   : > { %1346 = vmatprep.subr.bf16.mxu1 %v1696_v38 }
  0xa6   : > { %1334 = vmatpush3.bf16.msra.mxu0 %v1333_v55 }
  0xa7   : > { %1354 = vmatpush3.bf16.msra.mxu1 %v1333_v55  ;;  %1335 = vmatprep.subr.bf16.mxu0 %v1696_v38 }
  0xa8   : > { %1347 = vmatprep.subr.bf16.mxu1 %v1696_v38 }
  0xaa   : > { %1337 = vmatpush3.bf16.msra.mxu0 %v1336_v58 }
  0xab   : > { %1355 = vmatpush3.bf16.msra.mxu1 %v1336_v58  ;;  %1338 = vmatprep.subr.bf16.mxu0 %v1696_v38 }
  0xac   : > { %1348 = vmatprep.subr.bf16.mxu1 %v1696_v38  ;;  %v679_v38 = vld [vmem:[#allocation7 + $0x38] sm:$0xff] }
  0xad   : > { %v683_v40 = vrot.slane %v679_v38, 7 }
  0xae   : > { %1340 = vmatpush3.bf16.msra.mxu0 %v1339_v61 }
  0xaf   : > { %1356 = vmatpush3.bf16.msra.mxu1 %v1339_v61  ;;  %v577_v61 = vlaneseq }
  0xb1   : > { %1245 = vmatmul.mubr.f32.vlgmr.msra.gmra.mrb[6].mxu0 %v1932_v36  ;;  %v2066_v62 = vand.u32 127, %v577_v61 }
  0xb2   : > { %1248 = vmatmul.mubr.f32.vlgmr.msra.gmra.mrb[6].mxu1 %v237_v41  ;;  %v682_v41 = vrot.slane %v678_v39, 7 }
  0xb3   : > { %1250 = vmatprep.mubr.msk.f32.mxu1 %vm1697_vm0, %v1695_v0  ;;  %v736_v0 = vsel %vm733_vm1, %v734_v2, %v735_v1  ;;  %vm579_vm4 = vcmp.lt.s32.totalorder %v2066_v62, 120  ;;  %vm610_vm5 = vcmp.lt.s32.totalorder %v2066_v62, 112 }
  0xb4   : > { %v684_v42 = vsel %vm635_vm3, %v682_v41, %v683_v40 }
  0xb6   : > { %1251 = vmatmul.mubr.f32.gmra.mrb[8].mxu1 %v238_v45 }
 0x164   : > { %v385_v3 = vpop.f32.mrb[0].mxu0  ;;  %v1966_v6 = vpop.f32.mrb[0].mxu1 }
 0x165   : > { %565 = vrot.lane.b32.xlu0 %v385_v3, %s1698_s20  ;;  %v387_v5 = vpop.f32.mrb[1].mxu0  ;;  %v1969_v8 = vpop.f32.mrb[1].mxu1  ;;  %v631_v9 = vadd.f32 %v629_v4, %v385_v3  ;;  %v740_v10 = vadd.f32 %v734_v2, %v385_v3  ;;  %v849_v15 = vrot.slane %v1966_v6, 7  ;;  %v977_v16 = vrot.slane %v1966_v6, 1 }
 0x166   : > { %571 = vrot.lane.b32.xlu1 %v387_v5, %s1698_s20  ;;  %v688_v43 = vadd.f32 %v682_v41, %v385_v3 }
 0x167   : > { %v636_v17 = vrot.slane %v631_v9, 7  ;;  %v747_v18 = vrot.slane %v740_v10, 1  ;;  %v696_v9 = vld [vmem:[#allocation7 + $0x48] sm:$0xff]  ;;  %v760_v10 = vld [vmem:[#allocation7 + $0x78] sm:$0xff] }
 0x168   : > { %v391_v11 = vpop.f32.mrb[2].mxu0  ;;  %v1979_v20 = vpop.f32.mrb[2].mxu1 }
 0x169   : > { %v1972_v12 = vadd.f32 %v630_v7, %v391_v11  ;;  %598 = vrot.lane.b32.xlu0 %v385_v3, %s1699_s22  ;;  %v393_v13 = vpop.f32.mrb[3].mxu0  ;;  %v741_v14 = vadd.f32 %v736_v0, %v391_v11  ;;  %v850_v23 = vrot.slane %v1979_v20, 7  ;;  %v978_v24 = vrot.slane %v1979_v20, 1  ;;  %v476_v25 = vpop.f32.mrb[3].mxu1  ;;  %v695_v7 = vld [vmem:[#allocation7 + $0x40] sm:$0xff] }
 0x16a   : > { %600 = vrot.lane.b32.xlu1 %v391_v11, %s1699_s22  ;;  %v689_v44 = vadd.f32 %v684_v42, %v391_v11  ;;  %v663_v42 = vld [vmem:[#allocation7 + $0x28] sm:$0xff] }
 0x16b   : > { %v637_v19 = vrot.slane %v1972_v12, 7  ;;  %v748_v21 = vrot.slane %v741_v14, 1  ;;  %v1992_v30 = vsel %vm635_vm3, %v849_v15, %v850_v23  ;;  %v1995_v31 = vsel %vm746_vm2, %v977_v16, %v978_v24  ;;  %v712_v12 = vld [vmem:[#allocation7 + $0x50] sm:$0xff] }
 0x16c   : > { %v397_v22 = vpop.f32.mrb[4].mxu0  ;;  %v1997_v33 = vpop.f32.mrb[4].mxu1  ;;  %v699_v14 = vrot.slane %v695_v7, 7 }
 0x16d   : > { %v638_v26 = vsel %vm635_vm3, %v636_v17, %v637_v19  ;;  %v742_v27 = vadd.f32 %v735_v1, %v397_v22  ;;  %567 = vrot.lane.b32.xlu0 %v391_v11, %s1698_s20  ;;  %v399_v28 = vpop.f32.mrb[5].mxu0  ;;  %v749_v29 = vsel %vm746_vm2, %v747_v18, %v748_v21  ;;  %v980_v34 = vrot.slane %v1997_v33, 1  ;;  %v482_v35 = vpop.f32.mrb[5].mxu1  ;;  %v646_v1 = vld [vmem:[#allocation7 + $0x10] sm:$0xff]  ;;  %v787_v18 = vld [vmem:[#allocation7 + $0x80] sm:$0xff] }
 0x16e   : > { %573 = vrot.lane.b32.xlu1 %v393_v13, %s1698_s20  ;;  %v690_v55 = vadd.f32 %v683_v40, %v397_v22 }
 0x16f   : > { %v750_v32 = vrot.slane %v742_v27, 1  ;;  %v2006_v37 = vsel %vm746_vm2, %v978_v24, %v980_v34  ;;  %v700_v24 = vrot.slane %v696_v9, 7 }
 0x171   : > { %604 = vrot.lane.b32.xlu0 %v387_v5, %s1699_s22  ;;  %v751_v36 = vsel %vm746_vm2, %v748_v21, %v750_v32  ;;  %v759_v21 = vld [vmem:[#allocation7 + $0x70] sm:$0xff] }
 0x172   : > { %606 = vrot.lane.b32.xlu1 %v393_v13, %s1699_s22  ;;  %v2074_v13 = vld [vmem:[#allocation7 + $0x58] sm:$0xff]  ;;  %v763_v39 = vrot.slane %v759_v21, 6 }
 0x175   : > { %569 = vrot.lane.b32.xlu0 %v397_v22, %s1698_s20 }
 0x176   : > { %575 = vrot.lane.b32.xlu1 %v399_v28, %s1698_s20 }
 0x179   : > { %602 = vrot.lane.b32.xlu0 %v397_v22, %s1699_s22 }
 0x17a   : > { %608 = vrot.lane.b32.xlu1 %v399_v28, %s1699_s22  ;;  %v716_v28 = vrot.slane %v712_v12, 7 }
 0x17d   : > { %583 = vrot.lane.b32.xlu0 %v1966_v6, %s1698_s20 }
 0x17e   : > { %585 = vrot.lane.b32.xlu1 %v1979_v20, %s1698_s20 }
 0x181   : > { %589 = vrot.lane.b32.xlu0 %v1969_v8, %s1698_s20 }
 0x182   : > { %591 = vrot.lane.b32.xlu1 %v476_v25, %s1698_s20 }
 0x184   : > { %v2020_v45 = vpop.f32.mrb[6].mxu0 }
 0x185   : > { %v2022_v46 = vpop.f32.mrb[6].mxu1  ;;  %614 = vrot.lane.b32.xlu0 %v1966_v6, %s1699_s22  ;;  %v2027_v47 = vmul.f32 %v636_v17, %v2020_v45  ;;  %v2030_v48 = vmul.f32 %v688_v43, %v2020_v45  ;;  %v2033_v49 = vmul.f32 %v749_v29, %v2020_v45  ;;  %v1246_v50 = vpop.f32.mrb[7].mxu0  ;;  %v647_v17 = vld [vmem:[#allocation7 + $0x18] sm:$0xff]  ;;  %v717_v29 = vrot.slane %v2074_v13, 7 }
 0x186   : > { %616 = vrot.lane.b32.xlu1 %v1979_v20, %s1699_s22  ;;  %v1249_v51 = vpop.f32.mrb[7].mxu1  ;;  %v2038_v52 = vmul.f32 %v638_v26, %v2022_v46  ;;  %v2041_v53 = vmul.f32 %v689_v44, %v2022_v46  ;;  %v2044_v54 = vmul.f32 %v751_v36, %v2022_v46  ;;  %v791_v36 = vrot.slane %v787_v18, 6 }
 0x187   : > { %v701_v43 = vsel %vm635_vm3, %v699_v14, %v700_v24  ;;  %v718_v61 = vsel %vm635_vm3, %v716_v28, %v717_v29 }
 0x189   : > { %v2046_v56 = vpop.f32.mrb[8].mxu1  ;;  %620 = vrot.lane.b32.xlu0 %v1969_v8, %s1699_s22 }
 0x18a   : > { %622 = vrot.lane.b32.xlu1 %v476_v25, %s1699_s22  ;;  %v2052_v57 = vmul.f32 %v637_v19, %v2046_v56  ;;  %v1252_v58 = vpop.f32.mrb[9].mxu1  ;;  %v2055_v59 = vmul.f32 %v690_v55, %v2046_v56  ;;  %v2058_v60 = vmul.f32 %v750_v32, %v2046_v56  ;;  %v2076_v19 = vld [vmem:[#allocation7 + $0x88] sm:$0xff]  ;;  %v764_v25 = vrot.slane %v760_v10, 6 }
 0x18b   : > { %v792_v38 = vrot.slane %v2076_v19, 6 }
 0x18c   : > { %v765_v55 = vsel %vm733_vm1, %v763_v39, %v764_v25 }
 0x18d   : > { %587 = vrot.lane.b32.xlu0 %v1997_v33, %s1698_s20 }
 0x18e   : > { %593 = vrot.lane.b32.xlu1 %v482_v35, %s1698_s20 }
 0x191   : > { %618 = vrot.lane.b32.xlu0 %v1997_v33, %s1699_s22 }
 0x192   : > { %624 = vrot.lane.b32.xlu1 %v482_v35, %s1699_s22  ;;  %v662_v35 = vld [vmem:[#allocation7 + $0x20] sm:$0xff] }
 0x1d7   : > { %v566_v63 = vpop.permute.xlu0 %565 }
 0x1d8   : > { %v572_v2 = vpop.permute.xlu1 %571 }
 0x1d9   : > { %v580_v3 = vsel %vm579_vm4, %v566_v63, %v572_v2 }
 0x1da   : > { %v648_v4 = vadd.f32 %v646_v1, %v580_v3  ;;  %v705_v40 = vadd.f32 %v699_v14, %v580_v3  ;;  %v769_v9 = vadd.f32 %v763_v39, %v580_v3 }
 0x1db   : > { %v599_v5 = vpop.permute.xlu0 %598 }
 0x1dc   : > { %v652_v8 = vrot.slane %v648_v4, 7  ;;  %v601_v0 = vpop.permute.xlu1 %600  ;;  %v793_v4 = vsel %vm733_vm1, %v791_v36, %v792_v38 }
 0x1de   : > { %v2072_v11 = vmul.f32 %v652_v8, %v2020_v45 }
 0x1df   : > { %v568_v16 = vpop.permute.xlu0 %567 }
 0x1e0   : > { %v814_v22 = vmax.f32 %v2027_v47, %v2072_v11  ;;  %v574_v26 = vpop.permute.xlu1 %573 }
 0x1e1   : > { %v581_v27 = vsel %vm579_vm4, %v568_v16, %v574_v26 }
 0x1e2   : > { %v649_v32 = vadd.f32 %v647_v17, %v581_v27  ;;  %v770_v16 = vadd.f32 %v765_v55, %v581_v27  ;;  %v775_v55 = vrot.slane %v769_v9, 1 }
 0x1e3   : > { %v605_v41 = vpop.permute.xlu0 %604 }
 0x1e4   : > { %v653_v44 = vrot.slane %v649_v32, 7  ;;  %v611_v50 = vsel %vm610_vm5, %v599_v5, %v605_v41  ;;  %v607_v51 = vpop.permute.xlu1 %606  ;;  %v2100_v5 = vmul.f32 %v705_v40, %v2020_v45  ;;  %v706_v32 = vadd.f32 %v701_v43, %v581_v27 }
 0x1e5   : > { %v664_v58 = vadd.f32 %v662_v35, %v611_v50  ;;  %v612_v63 = vsel %vm610_vm5, %v601_v0, %v607_v51 }
 0x1e6   : > { %v654_v1 = vsel %vm635_vm3, %v652_v8, %v653_v44  ;;  %v2096_v2 = vmul.f32 %v653_v44, %v2046_v56  ;;  %v665_v7 = vadd.f32 %v663_v42, %v612_v63  ;;  %v797_v8 = vadd.f32 %v791_v36, %v611_v50 }
 0x1e7   : > { %v2103_v10 = vmul.f32 %v654_v1, %v2022_v46  ;;  %v668_v12 = vrot.slane %v664_v58, 7  ;;  %v570_v14 = vpop.permute.xlu0 %569  ;;  %v798_v26 = vadd.f32 %v793_v4, %v612_v63  ;;  %v722_v36 = vadd.f32 %v716_v28, %v611_v50 }
 0x1e8   : > { %v816_v0 = vmax.f32 %v2052_v57, %v2096_v2  ;;  %v669_v17 = vrot.slane %v665_v7, 7  ;;  %v576_v18 = vpop.permute.xlu1 %575  ;;  %v776_v58 = vrot.slane %v770_v16, 1  ;;  %v803_v1 = vrot.slane %v797_v8, 1 }
 0x1e9   : > { %v815_v19 = vmax.f32 %v2038_v52, %v2103_v10  ;;  %v2110_v21 = vmul.f32 %v668_v12, %v2020_v45  ;;  %v582_v3 = vsel %vm579_vm4, %v570_v14, %v576_v18  ;;  %v723_v7 = vadd.f32 %v718_v61, %v612_v63 }
 0x1ea   : > { %v670_v35 = vsel %vm635_vm3, %v668_v12, %v669_v17  ;;  %v2116_v39 = vmul.f32 %v669_v17, %v2046_v56  ;;  %v707_v40 = vadd.f32 %v700_v24, %v582_v3  ;;  %v771_v44 = vadd.f32 %v764_v25, %v582_v3 }
 0x1eb   : > { %v817_v41 = vmax.f32 %v814_v22, %v2110_v21  ;;  %v2120_v42 = vmul.f32 %v670_v35, %v2022_v46  ;;  %v603_v51 = vpop.permute.xlu0 %602  ;;  %v804_v12 = vrot.slane %v798_v26, 1  ;;  %v2132_v9 = vmul.f32 %v706_v32, %v2022_v46 }
 0x1ec   : > { %v819_v4 = vmax.f32 %v816_v0, %v2116_v39  ;;  %v609_v27 = vpop.permute.xlu1 %608  ;;  %v2127_v22 = vmul.f32 %v707_v40, %v2046_v56  ;;  %v778_v50 = vrot.slane %v771_v44, 1  ;;  %v2135_v14 = vmul.f32 %v722_v36, %v2020_v45 }
 0x1ed   : > { %v820_v43 = vmax.f32 %v817_v41, %v2030_v48  ;;  %v818_v24 = vmax.f32 %v815_v19, %v2120_v42  ;;  %v613_v25 = vsel %vm610_vm5, %v603_v51, %v609_v27  ;;  %v777_v16 = vsel %vm746_vm2, %v775_v55, %v776_v58 }
 0x1ee   : > { %v822_v28 = vmax.f32 %v819_v4, %v2055_v59  ;;  %v724_v8 = vadd.f32 %v717_v29, %v613_v25  ;;  %v799_v17 = vadd.f32 %v792_v38, %v613_v25  ;;  %v2145_v19 = vmul.f32 %v723_v7, %v2022_v46 }
 0x1ef   : > { %v823_v61 = vmax.f32 %v820_v43, %v2100_v5  ;;  %v821_v63 = vmax.f32 %v818_v24, %v2041_v53  ;;  %v805_v3 = vsel %vm746_vm2, %v803_v1, %v804_v12  ;;  %v779_v32 = vsel %vm746_vm2, %v776_v58, %v778_v50  ;;  %v584_v27 = vpop.permute.xlu0 %583 }
 0x1f0   : > { %v825_v0 = vmax.f32 %v822_v28, %v2127_v22  ;;  %v727_v35 = vmul.f32 %v724_v8, %v2046_v56  ;;  %v806_v40 = vrot.slane %v799_v17, 1  ;;  %v2152_v36 = vmul.f32 %v777_v16, %v2020_v45  ;;  %v586_v28 = vpop.permute.xlu1 %585 }
 0x1f1   : > { %v826_v18 = vmax.f32 %v823_v61, %v2135_v14  ;;  %v824_v26 = vmax.f32 %v821_v63, %v2132_v9  ;;  %v811_v51 = vmul.f32 %v805_v3, %v2020_v45  ;;  %v2161_v58 = vmul.f32 %v779_v32, %v2022_v46 }
 0x1f2   : > { %v807_v38 = vsel %vm746_vm2, %v804_v12, %v806_v40  ;;  %v828_v41 = vmax.f32 %v825_v0, %v727_v35  ;;  %v2164_v1 = vmul.f32 %v778_v50, %v2046_v56  ;;  %v2172_v24 = vmul.f32 %v806_v40, %v2046_v56 }
 0x1f3   : > { %v829_v13 = vmax.f32 %v826_v18, %v2033_v49  ;;  %v827_v29 = vmax.f32 %v824_v26, %v2145_v19  ;;  %v812_v12 = vmul.f32 %v807_v38, %v2022_v46  ;;  %v590_v26 = vpop.permute.xlu0 %589 }
 0x1f4   : > { %v831_v4 = vmax.f32 %v828_v41, %v2058_v60 }
 0x1f5   : > { %v832_v44 = vmax.f32 %v829_v13, %v2152_v36  ;;  %v830_v55 = vmax.f32 %v827_v29, %v2044_v54  ;;  %v592_v13 = vpop.permute.xlu1 %591 }
 0x1f6   : > { %v834_v45 = vmax.f32 %v831_v4, %v2164_v1 }
 0x1f7   : > { %v2167_v43 = vmax.f32 %v832_v44, %v811_v51  ;;  %v833_v7 = vmax.f32 %v830_v55, %v2161_v58  ;;  %v615_v55 = vpop.permute.xlu0 %614 }
 0x1f8   : > { %v2183_v16 = vmax.f32 %v834_v45, %v2172_v24 }
 0x1f9   : > { %v1018_v25 = vsub.f32 %v811_v51, %v2167_v43  ;;  %v2176_v61 = vmax.f32 %v833_v7, %v812_v12  ;;  %v838_v50 = vsub.f32 %v2027_v47, %v2167_v43  ;;  %v858_v63 = vsub.f32 %v2072_v11, %v2167_v43 }
 0x1fa   : > { %v928_v46 = vsub.f32 %v2100_v5, %v2167_v43  ;;  %v991_v56 = vsub.f32 %v2152_v36, %v2167_v43  ;;  %v948_v18 = vsub.f32 %v727_v35, %v2183_v16  ;;  %v966_v47 = vsub.f32 %v2058_v60, %v2183_v16 }
 0x1fb   : > { %v1021_v0 = vmul.f32 1.442695, %v1018_v25  ;;  %v1019_v8 = vsub.f32 %v812_v12, %v2176_v61  ;;  %v841_v17 = vmul.f32 1.442695, %v838_v50  ;;  %v1020_v11 = vsub.f32 %v2172_v24, %v2183_v16  ;;  %v617_v12 = vpop.permute.xlu1 %616 }
 0x1fc   : > { %v839_v5 = vsub.f32 %v2038_v52, %v2176_v61  ;;  %v840_v32 = vsub.f32 %v2052_v57, %v2183_v16  ;;  %v953_v40 = vmul.f32 1.442695, %v948_v18  ;;  %v971_v36 = vmul.f32 1.442695, %v966_v47 }
 0x1fd   : > { %v1023_v3 = vmul.f32 1.442695, %v1019_v8  ;;  %1454 = vpow2.f32 %v841_v17  ;;  %v2201_v35 = vsel %vm579_vm4, %v584_v27, %v590_v26  ;;  %v861_v60 = vmul.f32 1.442695, %v858_v63 }
 0x1fe   : > { %1456 = vpow2.f32 %v1021_v0  ;;  %v859_v29 = vsub.f32 %v2103_v10, %v2176_v61  ;;  %v931_v38 = vmul.f32 1.442695, %v928_v46  ;;  %v860_v52 = vsub.f32 %v2096_v2, %v2183_v16  ;;  %v621_v0 = vpop.permute.xlu0 %620 }
 0x1ff   : > { %1458 = vpow2.f32 %v1023_v3  ;;  %v929_v57 = vsub.f32 %v2132_v9, %v2176_v61  ;;  %v843_v41 = vmul.f32 1.442695, %v839_v5  ;;  %v872_v44 = vrot.slane %v2201_v35, 7  ;;  %v623_v26 = vpop.permute.xlu1 %622 }
 0x200   : > { %1460 = vpow2.f32 %v953_v40  ;;  %v845_v51 = vmul.f32 1.442695, %v840_v32  ;;  %v884_v4 = vsub.f32 %v2110_v21, %v2167_v43  ;;  %v863_v10 = vmul.f32 1.442695, %v859_v29 }
 0x201   : > { %1462 = vpow2.f32 %v971_v36  ;;  %v910_v27 = vsub.f32 %v2030_v48, %v2167_v43  ;;  %v946_v2 = vsub.f32 %v2135_v14, %v2167_v43  ;;  %v1004_v9 = vrot.slane %v2201_v35, 1 }
 0x202   : > { %1464 = vpow2.f32 %v861_v60  ;;  %v865_v7 = vmul.f32 1.442695, %v860_v52  ;;  %v964_v45 = vsub.f32 %v2033_v49, %v2167_v43  ;;  %v933_v25 = vmul.f32 1.442695, %v929_v57 }
 0x203   : > { %1466 = vpow2.f32 %v931_v38  ;;  %v2221_v21 = vsel %vm579_vm4, %v586_v28, %v592_v13  ;;  %v885_v48 = vsub.f32 %v2120_v42, %v2176_v61  ;;  %v994_v50 = vmul.f32 1.442695, %v991_v56 }
 0x204   : > { %1468 = vpow2.f32 %v843_v41  ;;  %v886_v14 = vsub.f32 %v2116_v39, %v2183_v16  ;;  %v911_v63 = vsub.f32 %v2041_v53, %v2176_v61  ;;  %v887_v46 = vmul.f32 1.442695, %v884_v4 }
 0x205   : > { %1470 = vpow2.f32 %v845_v51  ;;  %v947_v49 = vsub.f32 %v2145_v19, %v2176_v61  ;;  %v965_v43 = vsub.f32 %v2044_v54, %v2176_v61  ;;  %v873_v42 = vrot.slane %v2221_v21, 7 }
 0x206   : > { %1472 = vpow2.f32 %v863_v10  ;;  %v1005_v56 = vrot.slane %v2221_v21, 1  ;;  %v913_v8 = vmul.f32 1.442695, %v910_v27  ;;  %v2241_v19 = vsel %vm610_vm5, %v615_v55, %v621_v0  ;;  %v588_v10 = vpop.permute.xlu0 %587 }
 0x207   : > { %v1455_v28 = vpop.eup %1454  ;;  %1474 = vpow2.f32 %v865_v7  ;;  %v949_v17 = vmul.f32 1.442695, %v946_v2  ;;  %v967_v18 = vmul.f32 1.442695, %v964_v45  ;;  %v889_v47 = vmul.f32 1.442695, %v885_v48 }
 0x208   : > { %v2235_v39 = vpop.eup %1456  ;;  %v855_v53 = vmul.f32 %v1455_v28, %v849_v15  ;;  %1476 = vpow2.f32 %v933_v25  ;;  %v912_v3 = vsub.f32 %v2055_v59, %v2183_v16  ;;  %v930_v15 = vsub.f32 %v2127_v22, %v2183_v16 }
 0x209   : > { %v2243_v54 = vpop.eup %1458  ;;  %1478 = vpow2.f32 %v994_v50  ;;  %v992_v32 = vsub.f32 %v2161_v58, %v2176_v61  ;;  %v993_v40 = vsub.f32 %v2164_v1, %v2183_v16  ;;  %v1025_v13 = vmul.f32 1.442695, %v1020_v11 }
 0x20a   : > { %v2247_v5 = vpop.eup %1460  ;;  %1480 = vpow2.f32 %v887_v46  ;;  %v874_v59 = vsel %vm635_vm3, %v872_v44, %v873_v42  ;;  %v891_v60 = vmul.f32 1.442695, %v886_v14  ;;  %v898_v38 = vrot.slane %v2241_v19, 7 }
 0x20b   : > { %v2255_v36 = vpop.eup %1462  ;;  %1482 = vpow2.f32 %v913_v8  ;;  %v915_v22 = vmul.f32 1.442695, %v911_v63  ;;  %v2264_v58 = vsel %vm610_vm5, %v617_v12, %v623_v26  ;;  %v951_v24 = vmul.f32 1.442695, %v947_v49  ;;  %v619_v26 = vpop.permute.xlu0 %618 }
 0x20c   : > { %v1465_v29 = vpop.eup %1464  ;;  %1484 = vpow2.f32 %v949_v17  ;;  %v1031_v11 = vrot.slane %v2241_v19, 1  ;;  %v969_v57 = vmul.f32 1.442695, %v965_v43  ;;  %v2272_v41 = vmul.f32 %v2255_v36, %v980_v34 }
 0x20d   : > { %v2266_v1 = vpop.eup %1466  ;;  %v867_v61 = vadd.f32 %v1465_v29, %v1455_v28  ;;  %v878_v52 = vmul.f32 %v1465_v29, %v872_v44  ;;  %1486 = vpow2.f32 %v967_v18  ;;  %v917_v27 = vmul.f32 1.442695, %v912_v3  ;;  %v594_v44 = vpop.permute.xlu1 %593 }
 0x20e   : > { %v1469_v16 = vpop.eup %1468  ;;  %1488 = vpow2.f32 %v889_v47  ;;  %v899_v12 = vrot.slane %v2264_v58, 7  ;;  %v935_v45 = vmul.f32 1.442695, %v930_v15  ;;  %v2280_v50 = vsel %vm579_vm4, %v588_v10, %v594_v44 }
 0x20f   : > { %v1471_v51 = vpop.eup %1470  ;;  %v881_v55 = vadd.f32 %v878_v52, %v855_v53  ;;  %v856_v4 = vmul.f32 %v1469_v16, %v1992_v30  ;;  %1490 = vpow2.f32 %v891_v60  ;;  %v1032_v46 = vrot.slane %v2264_v58, 1 }
 0x210   : > { %v1473_v2 = vpop.eup %1472  ;;  %v857_v7 = vmul.f32 %v1471_v51, %v850_v23  ;;  %1492 = vpow2.f32 %v915_v22  ;;  %v996_v43 = vmul.f32 1.442695, %v992_v32  ;;  %v1007_v8 = vrot.slane %v2280_v50, 1 }
 0x211   : > { %v1475_v25 = vpop.eup %1474  ;;  %v868_v48 = vadd.f32 %v1473_v2, %v1469_v16  ;;  %v879_v34 = vmul.f32 %v1473_v2, %v874_v59  ;;  %1494 = vpow2.f32 %v951_v24  ;;  %v998_v47 = vmul.f32 1.442695, %v993_v40  ;;  %v625_v3 = vpop.permute.xlu1 %624 }
 0x212   : > { %v1477_v30 = vpop.eup %1476  ;;  %v869_v14 = vadd.f32 %v1475_v25, %v1471_v51  ;;  %v880_v63 = vmul.f32 %v1475_v25, %v873_v42  ;;  %1496 = vpow2.f32 %v969_v57  ;;  %v1006_v42 = vsel %vm746_vm2, %v1004_v9, %v1005_v56 }
 0x213   : > { %v2283_v49 = vpop.eup %1478  ;;  %v882_v23 = vadd.f32 %v879_v34, %v856_v4  ;;  %1498 = vpow2.f32 %v917_v27  ;;  %v900_v59 = vsel %vm635_vm3, %v898_v38, %v899_v12  ;;  %v1033_v60 = vsel %vm746_vm2, %v1031_v11, %v1032_v46 }
 0x214   : > { %v1481_v28 = vpop.eup %1480  ;;  %v883_v0 = vadd.f32 %v880_v63, %v857_v7  ;;  %1500 = vpow2.f32 %v935_v45  ;;  %v1039_v9 = vmul.f32 %v2235_v39, %v1033_v60  ;;  %v940_v40 = vmul.f32 %v2266_v1, %v2201_v35 }
 0x215   : > { %v1483_v53 = vpop.eup %1482  ;;  %v893_v17 = vadd.f32 %v1481_v28, %v867_v61  ;;  %v904_v18 = vmul.f32 %v1481_v28, %v898_v38  ;;  %1502 = vpow2.f32 %v1025_v13  ;;  %v2307_v38 = vsel %vm610_vm5, %v619_v26, %v625_v3 }
 0x216   : > { %v1485_v15 = vpop.eup %1484  ;;  %v922_v32 = vmul.f32 %v1483_v53, %v1966_v6  ;;  %1504 = vpow2.f32 %v996_v43  ;;  %v1008_v6 = vsel %vm746_vm2, %v1005_v56, %v1007_v8  ;;  %v941_v7 = vmul.f32 %v1477_v30, %v2221_v21 }
 0x217   : > { %v1487_v29 = vpop.eup %1486  ;;  %v907_v22 = vadd.f32 %v904_v18, %v881_v55  ;;  %v919_v52 = vadd.f32 %v1483_v53, %v893_v17  ;;  %1506 = vpow2.f32 %v998_v47  ;;  %v958_v35 = vmul.f32 %v1485_v15, %v2241_v19 }
 0x218   : > { %v1489_v61 = vpop.eup %1488  ;;  %v985_v13 = vmul.f32 %v1487_v29, %v1995_v31  ;;  %v1012_v43 = vmul.f32 %v2283_v49, %v1006_v42 }
 0x219   : > { %v1491_v24 = vpop.eup %1490  ;;  %v925_v16 = vadd.f32 %v922_v32, %v907_v22  ;;  %v937_v11 = vadd.f32 %v2266_v1, %v919_v52  ;;  %v894_v57 = vadd.f32 %v1489_v61, %v868_v48  ;;  %v905_v55 = vmul.f32 %v1489_v61, %v900_v59 }
 0x21a   : > { %v1493_v51 = vpop.eup %1492  ;;  %v895_v31 = vadd.f32 %v1491_v24, %v869_v14  ;;  %v906_v4 = vmul.f32 %v1491_v24, %v899_v12  ;;  %v1034_v1 = vrot.slane %v2307_v38, 1 }
 0x21b   : > { %v1495_v10 = vpop.eup %1494  ;;  %v943_v27 = vadd.f32 %v940_v40, %v925_v16  ;;  %v955_v44 = vadd.f32 %v1485_v15, %v937_v11  ;;  %v920_v56 = vadd.f32 %v1493_v51, %v894_v57  ;;  %v923_v62 = vmul.f32 %v1493_v51, %v1979_v20 }
 0x21c   : > { %v1497_v2 = vpop.eup %1496  ;;  %v908_v45 = vadd.f32 %v905_v55, %v882_v23  ;;  %v909_v25 = vadd.f32 %v906_v4, %v883_v0  ;;  %v959_v21 = vmul.f32 %v1495_v10, %v2264_v58 }
 0x21d   : > { %v1499_v48 = vpop.eup %1498  ;;  %v961_v34 = vadd.f32 %v958_v35, %v943_v27  ;;  %v973_v63 = vadd.f32 %v1487_v29, %v955_v44  ;;  %v938_v19 = vadd.f32 %v1477_v30, %v920_v56  ;;  %v986_v14 = vmul.f32 %v1497_v2, %v2006_v37 }
 0x21e   : > { %v1501_v12 = vpop.eup %1500  ;;  %v926_v28 = vadd.f32 %v923_v62, %v908_v45  ;;  %v921_v53 = vadd.f32 %v1499_v48, %v895_v31  ;;  %v924_v20 = vmul.f32 %v1499_v48, %v1997_v33  ;;  %v960_v33 = vmul.f32 %v2247_v5, %v2307_v38 }
 0x21f   : > { %v988_v17 = vadd.f32 %v985_v13, %v961_v34  ;;  %v956_v18 = vadd.f32 %v1495_v10, %v938_v19  ;;  %v1000_v23 = vadd.f32 %v2283_v49, %v973_v63  ;;  %v1503_v0 = vpop.eup %1502  ;;  %v942_v30 = vmul.f32 %v1501_v12, %v2280_v50 }
 0x220   : > { %v944_v47 = vadd.f32 %v941_v7, %v926_v28  ;;  %v927_v26 = vadd.f32 %v924_v20, %v909_v25  ;;  %v939_v3 = vadd.f32 %v1501_v12, %v921_v53  ;;  %v1505_v37 = vpop.eup %1504  ;;  %v1035_v49 = vsel %vm746_vm2, %v1032_v46, %v1034_v1 }
 0x221   : > { %v1015_v15 = vadd.f32 %v1012_v43, %v988_v17  ;;  %v1027_v42 = vadd.f32 %v2235_v39, %v1000_v23  ;;  %v974_v32 = vadd.f32 %v1497_v2, %v956_v18  ;;  %v1507_v22 = vpop.eup %1506  ;;  %v1013_v13 = vmul.f32 %v1505_v37, %v1008_v6 }
 0x222   : > { %v962_v59 = vadd.f32 %v959_v21, %v944_v47  ;;  %v945_v60 = vadd.f32 %v942_v30, %v927_v26  ;;  %v957_v29 = vadd.f32 %v2247_v5, %v939_v3  ;;  %v1040_v16 = vmul.f32 %v2243_v54, %v1035_v49 }
 0x223   : > { %v1042_v52 = vadd.f32 %v1039_v9, %v1015_v15  ;;  %1508 = vrcp.f32 %v1027_v42  ;;  %v1001_v61 = vadd.f32 %v1505_v37, %v974_v32  ;;  %v1014_v5 = vmul.f32 %v1507_v22, %v1007_v8 }
 0x224   : > { %v989_v40 = vadd.f32 %v986_v14, %v962_v59  ;;  %v975_v39 = vadd.f32 %v2255_v36, %v957_v29  ;;  %v963_v24 = vadd.f32 %v960_v33, %v945_v60  ;;  %v1041_v51 = vmul.f32 %v1503_v0, %v1034_v1 }
 0x225   : > { %v1028_v38 = vadd.f32 %v2243_v54, %v1001_v61 }
 0x226   : > { %v1016_v58 = vadd.f32 %v1013_v13, %v989_v40  ;;  %v1002_v46 = vadd.f32 %v1507_v22, %v975_v39  ;;  %v990_v9 = vadd.f32 %v2272_v41, %v963_v24 }
 0x227   : > { %1510 = vrcp.f32 %v1028_v38 }
 0x228   : > { %v1029_v11 = vadd.f32 %v1503_v0, %v1002_v46  ;;  %v1017_v57 = vadd.f32 %v1014_v5, %v990_v9  ;;  %v1043_v6 = vadd.f32 %v1040_v16, %v1016_v58 }
 0x22a   : > { %1512 = vrcp.f32 %v1029_v11  ;;  %v1044_v36 = vadd.f32 %v1041_v51, %v1017_v57 }
 0x22d   : > { %v1509_v35 = vpop.eup %1508 }
 0x22e   : > { %v1046_v31 = vmul.f32 %v1509_v35, %v1042_v52 }
 0x230   : > { %1051 = vst [vmem:[%s235_s9 - $0x1] sm:$0xfe] %v1046_v31 }
 0x231   : > { %v1511_v54 = vpop.eup %1510 }
 0x232   : > { %v1048_v50 = vmul.f32 %v1511_v54, %v1043_v6 }
 0x234   : > { %v1513_v8 = vpop.eup %1512  ;;  %1052 = vst [vmem:[%s235_s9 + $0x7] sm:$0xff] %v1048_v50 }
 0x235   : > { %v1050_v41 = vmul.f32 %v1513_v8, %v1044_v36 }
 0x237   : > { %1053 = vst [vmem:[%s235_s9 + $0xf] sm:$0x1] %v1050_v41 }
 0x238   : > { %1613 = shalt.err (!%p1610_p2)
}
 0x239   : > { %s1614_s6 = scalar_lea.hbm %s2338_s18, 256  ;;  %s1618_s20 = scalar_lea.hbm %s2392_s3, 512 }
 0x23a   : > { %p1615_p0 = scmp.ne.s32.totalorder %s2338_s18, %s1614_s6  ;;  %p1619_p6 = scmp.lt.u32.totalorder %s2338_s18, %s2392_s3 }
 0x23b   : > { %p1620_p7 = scmp.lt.u32.totalorder %s1618_s20, %s1614_s6  ;;  %p1622_p8 = scmp.lt.u32.totalorder %s1614_s6, %s2338_s18 }
 0x23c   : > { %p1616_p4 = pnand %p1615_p0, %p2407_p12 }
 0x23d   : > { %p1621_p11 = por %p1620_p7, %p1619_p6 }
 0x23e   : > { %p1617_p13 = pneg %p1616_p4 }
 0x23f   : > { %p1623_p1 = por %p1622_p8, %p1621_p11 }
 0x241   : > { %p1624_p10 = pnand %p1623_p1, %p1617_p13 }
 0x243   : > { %1627 = shalt.err (!%p1624_p10)
}
 0x244   : > { %s1701_s9 = smov 128   ;;  %s1702_s10 = smov 8  }
 0x245   : > { %1370 = dma.vmem_to_hbm [thread:$0]  (%p2407_p12), %s2340_s4, 256, %s2338_s18, %s1055_s30, %s1701_s9, %s1701_s9, %s1702_s10  }
 0x246 PF: > { %s1085_s8 = sand.u32 1, %s1666_s12   ;;  %p2408_p3 = scmp.ne.s32.totalorder %s2400_s23, 0 }
 0x247   : > { %p2409_p5 = scmp.ge.s32.totalorder %s1686_s17, 2  ;;  %s1086_s11 = scalar_lea.sflag [#allocation4], %s1085_s8 }
 0x249   : > { %p1384_p9 = pnand %p2409_p5, %p2408_p3 }
 0x24b   : > { %1661 = dma.done.wait (!%p1384_p9), %s1086_s11, 256  }
 0x24c   : > { %1663 = vsyncadd (!%p1384_p9), %s1086_s11, 4294967040  ;;  %s20_s17 = sadd.s32 1, %s1686_s17   ;;  %s2410_s12 = smov %s1670_s13 }
 0x24d   : > { %p17_p2 = scmp.ge.s32.totalorder %s20_s17, 4   ;;  %s2411_s13 = smov %s1674_s14 }
 0x24e   : > { %s2412_s14 = smov %s1871_s5  ;;  %s2413_s15 = smov %s1682_s16 }
 0x24f   : > { %s2414_s16 = smov %s2416_s19  ;;  %19 = sbr.rel (!%p17_p2) target bundleno = 7 (0x7), region = 93 }
 0x256   :  { %1091 = vsyncpa [#allocation3], 1 }
 0x257   :  { %1093 = vsyncpa [#allocation3 + $0x1], 1 }
 0x258   :  { %1094 = vsyncpa [#allocation6], 1 }
 0x259   :  { %1095 = vsyncpa [#allocation4], 1 }
 0x25a   :  { %1097 = vsyncpa [#allocation4 + $0x1], 1 }

</bundles_post_ra>
